<compile_context>
chip_gen: v7x
topology: tpu7x:2x2x1
jax: 0.10.0
libtpu: 0.0.40
codegen_flags: <defaults>
</compile_context>

<pallas_src>
import functools

import jax
import jax.numpy as jnp
import numpy as np
from jax import lax
from jax.experimental import pallas as pl
from jax.experimental.pallas import tpu as pltpu

LANE = 128
SUBLANE = 8


def _round_up(x, m):
    return ((x + m - 1) // m) * m


def _pad_to(x, shape):
    pads = [(0, s - d) for d, s in zip(x.shape, shape)]
    if all(p == (0, 0) for p in pads):
        return x
    return jnp.pad(x, pads)


def _coattention_kernel(maps_ref, hid_ref,
                        mw_ref, mb_ref,
                        hw_ref, hb_ref,
                        rw_ref, rb_ref,
                        cw_ref, cb_ref,
                        out_ref, sm_ref,
                        scores_ref,
                        *, p_tile, p_valid):
    t_tile, p_pad = scores_ref.shape
    num_pt = p_pad // p_tile

    hid = hid_ref[...]                                                   # (Tt, Hp) bf16
    # Token projection into attention space (MXU, bf16 in / f32 accumulate).
    hid_lin = jnp.dot(hid, hw_ref[...],
                      preferred_element_type=jnp.float32) + hb_ref[...]  # (Tt, Ap) f32
    # Hoisted broadcasts (do NOT re-broadcast inside the P-tile loop).
    hid_lin_b = hid_lin[:, None, :]                                      # (Tt, 1, Ap)
    rw3 = rw_ref[...][None, :, :]                                        # (1, 1, Ap)
    rb = rb_ref[0]                                                       # SMEM scalar

    # ---- Pass 1: scores, one pixel tile at a time --------------------------
    # Live set per iteration is bounded to (Tt, p_tile, Ap); the pixel-tile
    # map projection is recomputed per tile (tiny MXU work, keeps VMEM small).
    @pl.loop(0, num_pt)
    def _(pt):
        p0 = pl.multiple_of(pt * p_tile, p_tile)
        maps_tile = maps_ref[pl.ds(p0, p_tile), :]                       # (Pt, Mp) bf16
        map_lin = jnp.dot(maps_tile, mw_ref[...],
                          preferred_element_type=jnp.float32) + mb_ref[...]   # (Pt, Ap)
        rect = jnp.maximum(hid_lin_b + map_lin[None, :, :], 0.0)         # (Tt, Pt, Ap)
        # A is padded to a multiple of 128 so this reduce runs over dense vregs.
        s = jnp.sum(rect * rw3, axis=-1) + rb                            # (Tt, Pt)
        scores_ref[:, pl.ds(p0, p_tile)] = s

    # ---- Pass 2: softmax over the (lane-dense) pixel axis ------------------
    scores = scores_ref[...]
    if p_valid != p_pad:  # mask padded pixel columns so they get zero weight
        col = lax.broadcasted_iota(jnp.int32, (t_tile, p_pad), 1)
        scores = jnp.where(col < p_valid, scores, -1e30)
    m = jnp.max(scores, axis=-1, keepdims=True)
    e = jnp.exp(scores - m)
    denom = jnp.sum(e, axis=-1, keepdims=True)
    softmap = e * pl.reciprocal(denom, approx=True)                      # (Tt, Pp) f32

    # ---- Pooling + output projection, gated by the hiddens -----------------
    pooled = jnp.dot(softmap.astype(maps_ref.dtype), maps_ref[...],
                     preferred_element_type=jnp.float32)                 # (Tt, Mp)
    co = jnp.dot(pooled.astype(cw_ref.dtype), cw_ref[...],
                 preferred_element_type=jnp.float32) + cb_ref[...]       # (Tt, Hp)

    out_ref[...] = (co * hid.astype(jnp.float32)).astype(out_ref.dtype)
    sm_ref[...] = softmap.astype(sm_ref.dtype)


def co_attention(maps, hiddens, params, *, compute_dtype=jnp.bfloat16, p_tile=LANE):
    """maps: (B, x, y, M) f32; hiddens: (B, T, H) f32. Returns (co_att, softmap)."""
    B, X, Y, M = maps.shape
    _, T, H = hiddens.shape
    P = X * Y
    A = params["map_w"].shape[1]
    assert p_tile % LANE == 0

    # Lane-dense padding.  Zero padding is correctness-neutral everywhere except
    # the pixel axis, whose padded score columns are masked before the softmax.
    A_pad = _round_up(A, LANE)
    M_pad = _round_up(M, LANE)
    H_pad = _round_up(H, LANE)
    P_pad = _round_up(P, p_tile)
    t_tile = min(_round_up(T, SUBLANE), 128)
    T_pad = _round_up(T, t_tile)
    num_t = T_pad // t_tile

    f32 = jnp.float32
    maps_p = _pad_to(maps.reshape(B, P, M), (B, P_pad, M_pad)).astype(compute_dtype)
    hid_p = _pad_to(hiddens, (B, T_pad, H_pad)).astype(compute_dtype)
    mw = _pad_to(params["map_w"], (M_pad, A_pad)).astype(compute_dtype)
    mb = _pad_to(params["map_b"].reshape(1, A), (1, A_pad)).astype(f32)
    hw = _pad_to(params["hidden_w"], (H_pad, A_pad)).astype(compute_dtype)
    hb = _pad_to(params["hidden_b"].reshape(1, A), (1, A_pad)).astype(f32)
    rw = _pad_to(params["rect_w"].reshape(1, A), (1, A_pad)).astype(f32)
    rb = params["rect_b"].reshape(1).astype(f32)
    cw = _pad_to(params["coatt_w"], (M_pad, H_pad)).astype(compute_dtype)
    cb = _pad_to(params["coatt_b"].reshape(1, H), (1, H_pad)).astype(f32)

    def wspec(shape):
        return pl.BlockSpec(shape, lambda b, t: (0, 0))

    in_specs = [
        pl.BlockSpec((None, P_pad, M_pad), lambda b, t: (b, 0, 0)),   # maps (full P)
        pl.BlockSpec((None, t_tile, H_pad), lambda b, t: (b, t, 0)),  # hiddens tile
        wspec((M_pad, A_pad)),                                        # map_w
        wspec((1, A_pad)),                                            # map_b
        wspec((H_pad, A_pad)),                                        # hidden_w
        wspec((1, A_pad)),                                            # hidden_b
        wspec((1, A_pad)),                                            # rect_w
        pl.BlockSpec(memory_space=pltpu.MemorySpace.SMEM),            # rect_b scalar
        wspec((M_pad, H_pad)),                                        # coatt_w
        wspec((1, H_pad)),                                            # coatt_b
    ]
    out_specs = [
        pl.BlockSpec((None, t_tile, H_pad), lambda b, t: (b, t, 0)),  # co_att
        pl.BlockSpec((None, t_tile, P_pad), lambda b, t: (b, t, 0)),  # softmap (lane-dense)
    ]

    # Size the scoped-VMEM limit from the real block/scratch footprint
    # (+ headroom), clamped to a range safe on v5e/v6e (128 MiB) and v7x (64 MiB).
    isz = jnp.dtype(compute_dtype).itemsize
    block_bytes = (P_pad * M_pad * isz + t_tile * H_pad * isz
                   + (M_pad + H_pad) * A_pad * isz + M_pad * H_pad * isz
                   + 3 * A_pad * 4 + H_pad * 4
                   + t_tile * H_pad * 4 + t_tile * P_pad * 4)
    scratch_bytes = t_tile * P_pad * 4
    live_bytes = 2 * t_tile * p_tile * A_pad * 4      # per-P-tile rect working set
    vmem_need = 2 * block_bytes + scratch_bytes + live_bytes
    vmem_limit = int(min(max(2 * vmem_need, 32 * 1024 * 1024), 64 * 1024 * 1024))

    kernel = functools.partial(_coattention_kernel, p_tile=p_tile, p_valid=P)
    out_pad, sm_pad = pl.pallas_call(
        kernel,
        out_shape=(jax.ShapeDtypeStruct((B, T_pad, H_pad), f32),
                   jax.ShapeDtypeStruct((B, T_pad, P_pad), f32)),
        grid_spec=pltpu.PrefetchScalarGridSpec(
            num_scalar_prefetch=0,
            grid=(B, num_t),
            in_specs=in_specs,
            out_specs=out_specs,
            scratch_shapes=[pltpu.VMEM((t_tile, P_pad), f32)],
        ),
        compiler_params=pltpu.CompilerParams(
            dimension_semantics=("parallel", "parallel"),
            vmem_limit_bytes=vmem_limit),
    )(maps_p, hid_p, mw, mb, hw, hb, rw, rb, cw, cb)

    return out_pad[:, :T, :H], sm_pad[:, :T, :P]


def co_attention_reference(maps, hiddens, params):
    """Pure-JAX f32 reference mirroring the PyTorch forward exactly."""
    B = maps.shape[0]
    M = maps.shape[-1]
    fm = maps.reshape(B, -1, M)
    ml = fm @ params["map_w"] + params["map_b"]                # (B, P, A)
    hl = hiddens @ params["hidden_w"] + params["hidden_b"]     # (B, T, A)
    ps = ml[:, None, :, :] + hl[:, :, None, :]                 # (B, T, P, A)
    r = jnp.maximum(ps, 0.0)
    rl = jnp.einsum("btpa,a->btp", r, params["rect_w"]) + params["rect_b"]
    sm = jax.nn.softmax(rl, axis=2)
    pooled = jnp.einsum("btp,bpm->btm", sm, fm)
    co = pooled @ params["coatt_w"] + params["coatt_b"]
    return co * hiddens, sm


def init_params(key, map_dim, hidden_dim, attention_dim):
    ks = jax.random.split(key, 8)
    s = 0.1
    return {
        "map_w": s * jax.random.normal(ks[0], (map_dim, attention_dim), jnp.float32),
        "map_b": s * jax.random.normal(ks[1], (attention_dim,), jnp.float32),
        "hidden_w": s * jax.random.normal(ks[2], (hidden_dim, attention_dim), jnp.float32),
        "hidden_b": s * jax.random.normal(ks[3], (attention_dim,), jnp.float32),
        "rect_w": s * jax.random.normal(ks[4], (attention_dim,), jnp.float32),
        "rect_b": s * jax.random.normal(ks[5], (), jnp.float32),
        "coatt_w": s * jax.random.normal(ks[6], (map_dim, hidden_dim), jnp.float32),
        "coatt_b": s * jax.random.normal(ks[7], (hidden_dim,), jnp.float32),
    }


if __name__ == "__main__":
    B, X, Y = 2, 4, 4          # P = 16 pixels
    MAP_DIM = 8
    HIDDEN_DIM = 32
    ATTN_DIM = 64
    T = 8                      # n_tokens

    key = jax.random.PRNGKey(0)
    k_maps, k_hid, k_params = jax.random.split(key, 3)
    maps = jax.random.normal(k_maps, (B, X, Y, MAP_DIM), jnp.float32)
    hiddens = jax.random.normal(k_hid, (B, T, HIDDEN_DIM), jnp.float32)
    params = init_params(k_params, MAP_DIM, HIDDEN_DIM, ATTN_DIM)

    co_att, softmap = co_attention(maps, hiddens, params)
    jax.block_until_ready((co_att, softmap))

    co_ref, sm_ref = co_attention_reference(maps, hiddens, params)
    # Tolerances account for bf16 matmuls (f32 accumulation) + approx reciprocal.
    np.testing.assert_allclose(np.asarray(softmap), np.asarray(sm_ref),
                               rtol=5e-2, atol=2e-3)
    np.testing.assert_allclose(np.asarray(co_att), np.asarray(co_ref),
                               rtol=5e-2, atol=1e-2)

    print("KERNEL_OK")
</pallas_src>

<mosaic_0001>
module attributes {stable_mosaic.version = 11 : i64} {
  func.func @_coattention_kernel(%arg0: i32, %arg1: i32, %arg2: memref<1x128x128xbf16, #tpu.memory_space<vmem>>, %arg3: memref<1x8x128xbf16, #tpu.memory_space<vmem>>, %arg4: memref<128x128xbf16, #tpu.memory_space<vmem>>, %arg5: memref<1x128xf32, #tpu.memory_space<vmem>>, %arg6: memref<128x128xbf16, #tpu.memory_space<vmem>>, %arg7: memref<1x128xf32, #tpu.memory_space<vmem>>, %arg8: memref<1x128xf32, #tpu.memory_space<vmem>>, %arg9: memref<1xf32, #tpu.memory_space<smem>>, %arg10: memref<128x128xbf16, #tpu.memory_space<vmem>>, %arg11: memref<1x128xf32, #tpu.memory_space<vmem>>, %arg12: memref<1x8x128xf32, #tpu.memory_space<vmem>>, %arg13: memref<1x8x128xf32, #tpu.memory_space<vmem>>, %arg14: memref<8x128xf32, #tpu.memory_space<vmem>>) attributes {dimension_semantics = [#tpu.dimension_semantics<parallel>, #tpu.dimension_semantics<parallel>], iteration_bounds = array<i64: 2, 1>, scalar_prefetch = 0 : i64, scratch_operands = 1 : i64, tpu.core_type = #tpu.core_type<tc>, window_params = [{transform_indices = @transform_0, window_bounds = array<i64: 1, 128, 128>}, {transform_indices = @transform_1, window_bounds = array<i64: 1, 8, 128>}, {pipeline_mode = #tpu.pipeline_mode<synchronous>, transform_indices = @transform_2, window_bounds = array<i64: 128, 128>}, {pipeline_mode = #tpu.pipeline_mode<synchronous>, transform_indices = @transform_3, window_bounds = array<i64: 1, 128>}, {pipeline_mode = #tpu.pipeline_mode<synchronous>, transform_indices = @transform_4, window_bounds = array<i64: 128, 128>}, {pipeline_mode = #tpu.pipeline_mode<synchronous>, transform_indices = @transform_5, window_bounds = array<i64: 1, 128>}, {pipeline_mode = #tpu.pipeline_mode<synchronous>, transform_indices = @transform_6, window_bounds = array<i64: 1, 128>}, {transform_indices = @transform_7, window_bounds = array<i64: 1>}, {pipeline_mode = #tpu.pipeline_mode<synchronous>, transform_indices = @transform_8, window_bounds = array<i64: 128, 128>}, {pipeline_mode = #tpu.pipeline_mode<synchronous>, transform_indices = @transform_9, window_bounds = array<i64: 1, 128>}, {transform_indices = @transform_10, window_bounds = array<i64: 1, 8, 128>}, {transform_indices = @transform_11, window_bounds = array<i64: 1, 8, 128>}]} {
    %c0 = arith.constant 0 : index
    %c0_0 = arith.constant 0 : index
    %c0_1 = arith.constant 0 : index
    %0 = vector.load %arg3[%c0, %c0_0, %c0_1] : memref<1x8x128xbf16, #tpu.memory_space<vmem>>, vector<1x8x128xbf16>
    %1 = vector.shape_cast %0 : vector<1x8x128xbf16> to vector<8x128xbf16>
    %c0_2 = arith.constant 0 : index
    %c0_3 = arith.constant 0 : index
    %2 = vector.load %arg6[%c0_2, %c0_3] : memref<128x128xbf16, #tpu.memory_space<vmem>>, vector<128x128xbf16>
    %cst = arith.constant dense<0.000000e+00> : vector<8x128xf32>
    %3 = tpu.matmul %1, %2, %cst {dimension_numbers = #tpu.dot_dimension_numbers<[1], [0], [0], [1], [0, 0, 1, 1], [], []>} : vector<8x128xbf16>, vector<128x128xbf16>, vector<8x128xf32> -> vector<8x128xf32>
    %c0_4 = arith.constant 0 : index
    %c0_5 = arith.constant 0 : index
    %4 = vector.load %arg7[%c0_4, %c0_5] : memref<1x128xf32, #tpu.memory_space<vmem>>, vector<1x128xf32>
    %5 = vector.broadcast %4 : vector<1x128xf32> to vector<8x128xf32>
    %6 = arith.addf %3, %5 : vector<8x128xf32>
    %7 = vector.shape_cast %6 : vector<8x128xf32> to vector<8x1x128xf32>
    %c0_6 = arith.constant 0 : index
    %c0_7 = arith.constant 0 : index
    %8 = vector.load %arg8[%c0_6, %c0_7] : memref<1x128xf32, #tpu.memory_space<vmem>>, vector<1x128xf32>
    %9 = vector.shape_cast %8 : vector<1x128xf32> to vector<1x1x128xf32>
    %c0_8 = arith.constant 0 : index
    %10 = memref.load %arg9[%c0_8] : memref<1xf32, #tpu.memory_space<smem>>
    %c0_i32 = arith.constant 0 : i32
    %c1_i32 = arith.constant 1 : i32
    %11 = arith.muli %c0_i32, %c1_i32 : i32
    %c0_i32_9 = arith.constant 0 : i32
    %12 = arith.addi %c0_i32_9, %11 : i32
    %c128_i32 = arith.constant 128 : i32
    %13 = arith.muli %12, %c128_i32 : i32
    %14 = tpu.assume_multiple %13, 128 : i32
    %c0_10 = arith.constant 0 : index
    %15 = arith.index_cast %14 : i32 to index
    %c0_11 = arith.constant 0 : index
    %16 = vector.load %arg2[%c0_10, %15, %c0_11] : memref<1x128x128xbf16, #tpu.memory_space<vmem>>, vector<1x128x128xbf16>
    %17 = vector.shape_cast %16 : vector<1x128x128xbf16> to vector<128x128xbf16>
    %c0_12 = arith.constant 0 : index
    %c0_13 = arith.constant 0 : index
    %18 = vector.load %arg4[%c0_12, %c0_13] : memref<128x128xbf16, #tpu.memory_space<vmem>>, vector<128x128xbf16>
    %cst_14 = arith.constant dense<0.000000e+00> : vector<128x128xf32>
    %19 = tpu.matmul %17, %18, %cst_14 {dimension_numbers = #tpu.dot_dimension_numbers<[1], [0], [0], [1], [0, 0, 1, 1], [], []>} : vector<128x128xbf16>, vector<128x128xbf16>, vector<128x128xf32> -> vector<128x128xf32>
    %c0_15 = arith.constant 0 : index
    %c0_16 = arith.constant 0 : index
    %20 = vector.load %arg5[%c0_15, %c0_16] : memref<1x128xf32, #tpu.memory_space<vmem>>, vector<1x128xf32>
    %21 = vector.broadcast %20 : vector<1x128xf32> to vector<128x128xf32>
    %22 = arith.addf %19, %21 : vector<128x128xf32>
    %23 = vector.shape_cast %22 : vector<128x128xf32> to vector<1x128x128xf32>
    %24 = vector.broadcast %7 : vector<8x1x128xf32> to vector<8x128x128xf32>
    %25 = vector.broadcast %23 : vector<1x128x128xf32> to vector<8x128x128xf32>
    %26 = arith.addf %24, %25 : vector<8x128x128xf32>
    %cst_17 = arith.constant 0.000000e+00 : f32
    %27 = vector.broadcast %cst_17 : f32 to vector<8x128x128xf32>
    %28 = arith.maximumf %26, %27 : vector<8x128x128xf32>
    %29 = vector.broadcast %9 : vector<1x1x128xf32> to vector<8x128x128xf32>
    %30 = arith.mulf %28, %29 : vector<8x128x128xf32>
    %cst_18 = arith.constant dense<0.000000e+00> : vector<8x128xf32>
    %31 = vector.multi_reduction <add>, %30, %cst_18 [2] : vector<8x128x128xf32> to vector<8x128xf32>
    %32 = vector.broadcast %10 : f32 to vector<8x128xf32>
    %33 = arith.addf %31, %32 : vector<8x128xf32>
    %c0_19 = arith.constant 0 : index
    %34 = arith.index_cast %14 : i32 to index
    %35 = vector.load %arg14[%c0_19, %34] : memref<8x128xf32, #tpu.memory_space<vmem>>, vector<8x128xf32>
    tpu.vector_store %arg14[%c0_19, %34], %33 {strides = array<i32>} : memref<8x128xf32, #tpu.memory_space<vmem>>, vector<8x128xf32>,
    %c1_i32_20 = arith.constant 1 : i32
    %c0_21 = arith.constant 0 : index
    %c0_22 = arith.constant 0 : index
    %36 = vector.load %arg14[%c0_21, %c0_22] : memref<8x128xf32, #tpu.memory_space<vmem>>, vector<8x128xf32>
    %37 = tpu.iota {dimensions = array<i32: 1>} : vector<8x128xi32>
    %c16_i32 = arith.constant 16 : i32
    %38 = vector.broadcast %c16_i32 : i32 to vector<8x128xi32>
    %39 = arith.cmpi slt, %37, %38 : vector<8x128xi32>
    %cst_23 = arith.constant -1.000000e+30 : f32
    %40 = vector.broadcast %cst_23 : f32 to vector<8x128xf32>
    %41 = arith.select %39, %36, %40 : vector<8x128xi1>, vector<8x128xf32>
    %cst_24 = arith.constant dense<0xFF800000> : vector<8xf32>
    %42 = vector.multi_reduction <maximumf>, %41, %cst_24 [1] : vector<8x128xf32> to vector<8xf32>
    %43 = vector.shape_cast %42 : vector<8xf32> to vector<8x1xf32>
    %44 = vector.broadcast %43 : vector<8x1xf32> to vector<8x128xf32>
    %45 = arith.subf %41, %44 : vector<8x128xf32>
    %46 = math.exp %45 : vector<8x128xf32>
    %cst_25 = arith.constant dense<0.000000e+00> : vector<8xf32>
    %47 = vector.multi_reduction <add>, %46, %cst_25 [1] : vector<8x128xf32> to vector<8xf32>
    %48 = vector.shape_cast %47 : vector<8xf32> to vector<8x1xf32>
    %49 = tpu.reciprocal %48 {approx = true} : vector<8x1xf32> -> vector<8x1xf32>
    %50 = vector.broadcast %49 : vector<8x1xf32> to vector<8x128xf32>
    %51 = arith.mulf %46, %50 : vector<8x128xf32>
    %52 = arith.truncf %51 : vector<8x128xf32> to vector<8x128xbf16>
    %c0_26 = arith.constant 0 : index
    %c0_27 = arith.constant 0 : index
    %c0_28 = arith.constant 0 : index
    %53 = vector.load %arg2[%c0_26, %c0_27, %c0_28] : memref<1x128x128xbf16, #tpu.memory_space<vmem>>, vector<1x128x128xbf16>
    %54 = vector.shape_cast %53 : vector<1x128x128xbf16> to vector<128x128xbf16>
    %cst_29 = arith.constant dense<0.000000e+00> : vector<8x128xf32>
    %55 = tpu.matmul %52, %54, %cst_29 {dimension_numbers = #tpu.dot_dimension_numbers<[1], [0], [0], [1], [0, 0, 1, 1], [], []>} : vector<8x128xbf16>, vector<128x128xbf16>, vector<8x128xf32> -> vector<8x128xf32>
    %56 = arith.truncf %55 : vector<8x128xf32> to vector<8x128xbf16>
    %c0_30 = arith.constant 0 : index
    %c0_31 = arith.constant 0 : index
    %57 = vector.load %arg10[%c0_30, %c0_31] : memref<128x128xbf16, #tpu.memory_space<vmem>>, vector<128x128xbf16>
    %cst_32 = arith.constant dense<0.000000e+00> : vector<8x128xf32>
    %58 = tpu.matmul %56, %57, %cst_32 {dimension_numbers = #tpu.dot_dimension_numbers<[1], [0], [0], [1], [0, 0, 1, 1], [], []>} : vector<8x128xbf16>, vector<128x128xbf16>, vector<8x128xf32> -> vector<8x128xf32>
    %c0_33 = arith.constant 0 : index
    %c0_34 = arith.constant 0 : index
    %59 = vector.load %arg11[%c0_33, %c0_34] : memref<1x128xf32, #tpu.memory_space<vmem>>, vector<1x128xf32>
    %60 = vector.broadcast %59 : vector<1x128xf32> to vector<8x128xf32>
    %61 = arith.addf %58, %60 : vector<8x128xf32>
    %62 = arith.extf %1 : vector<8x128xbf16> to vector<8x128xf32>
    %63 = arith.mulf %61, %62 : vector<8x128xf32>
    %c0_35 = arith.constant 0 : index
    %c0_36 = arith.constant 0 : index
    %c0_37 = arith.constant 0 : index
    %64 = vector.load %arg12[%c0_35, %c0_36, %c0_37] : memref<1x8x128xf32, #tpu.memory_space<vmem>>, vector<1x8x128xf32>
    %65 = vector.shape_cast %64 : vector<1x8x128xf32> to vector<8x128xf32>
    %66 = vector.shape_cast %63 : vector<8x128xf32> to vector<1x8x128xf32>
    tpu.vector_store %arg12[%c0_35, %c0_36, %c0_37], %66 {strides = array<i32>} : memref<1x8x128xf32, #tpu.memory_space<vmem>>, vector<1x8x128xf32>,
    %c0_38 = arith.constant 0 : index
    %c0_39 = arith.constant 0 : index
    %c0_40 = arith.constant 0 : index
    %67 = vector.load %arg13[%c0_38, %c0_39, %c0_40] : memref<1x8x128xf32, #tpu.memory_space<vmem>>, vector<1x8x128xf32>
    %68 = vector.shape_cast %67 : vector<1x8x128xf32> to vector<8x128xf32>
    %69 = vector.shape_cast %51 : vector<8x128xf32> to vector<1x8x128xf32>
    tpu.vector_store %arg13[%c0_38, %c0_39, %c0_40], %69 {strides = array<i32>} : memref<1x8x128xf32, #tpu.memory_space<vmem>>, vector<1x8x128xf32>,
    return
  }
  func.func @transform_0(%arg0: i32, %arg1: i32) -> (i32, i32, i32) {
    %c0_i32 = arith.constant 0 : i32
    %c0_i32_0 = arith.constant 0 : i32
    %c0_i32_1 = arith.constant 0 : i32
    return %arg0, %c0_i32, %c0_i32_0 : i32, i32, i32
  }
  func.func @transform_1(%arg0: i32, %arg1: i32) -> (i32, i32, i32) {
    %c0_i32 = arith.constant 0 : i32
    %c0_i32_0 = arith.constant 0 : i32
    return %arg0, %arg1, %c0_i32 : i32, i32, i32
  }
  func.func @transform_2(%arg0: i32, %arg1: i32) -> (i32, i32) {
    %c0_i32 = arith.constant 0 : i32
    %c0_i32_0 = arith.constant 0 : i32
    %c0_i32_1 = arith.constant 0 : i32
    return %c0_i32, %c0_i32_0 : i32, i32
  }
  func.func @transform_3(%arg0: i32, %arg1: i32) -> (i32, i32) {
    %c0_i32 = arith.constant 0 : i32
    %c0_i32_0 = arith.constant 0 : i32
    %c0_i32_1 = arith.constant 0 : i32
    return %c0_i32, %c0_i32_0 : i32, i32
  }
  func.func @transform_4(%arg0: i32, %arg1: i32) -> (i32, i32) {
    %c0_i32 = arith.constant 0 : i32
    %c0_i32_0 = arith.constant 0 : i32
    %c0_i32_1 = arith.constant 0 : i32
    return %c0_i32, %c0_i32_0 : i32, i32
  }
  func.func @transform_5(%arg0: i32, %arg1: i32) -> (i32, i32) {
    %c0_i32 = arith.constant 0 : i32
    %c0_i32_0 = arith.constant 0 : i32
    %c0_i32_1 = arith.constant 0 : i32
    return %c0_i32, %c0_i32_0 : i32, i32
  }
  func.func @transform_6(%arg0: i32, %arg1: i32) -> (i32, i32) {
    %c0_i32 = arith.constant 0 : i32
    %c0_i32_0 = arith.constant 0 : i32
    %c0_i32_1 = arith.constant 0 : i32
    return %c0_i32, %c0_i32_0 : i32, i32
  }
  func.func @transform_7(%arg0: i32, %arg1: i32) -> i32 {
    %c0_i32 = arith.constant 0 : i32
    %c0_i32_0 = arith.constant 0 : i32
    return %c0_i32 : i32
  }
  func.func @transform_8(%arg0: i32, %arg1: i32) -> (i32, i32) {
    %c0_i32 = arith.constant 0 : i32
    %c0_i32_0 = arith.constant 0 : i32
    %c0_i32_1 = arith.constant 0 : i32
    return %c0_i32, %c0_i32_0 : i32, i32
  }
  func.func @transform_9(%arg0: i32, %arg1: i32) -> (i32, i32) {
    %c0_i32 = arith.constant 0 : i32
    %c0_i32_0 = arith.constant 0 : i32
    %c0_i32_1 = arith.constant 0 : i32
    return %c0_i32, %c0_i32_0 : i32, i32
  }
  func.func @transform_10(%arg0: i32, %arg1: i32) -> (i32, i32, i32) {
    %c0_i32 = arith.constant 0 : i32
    %c0_i32_0 = arith.constant 0 : i32
    return %arg0, %arg1, %c0_i32 : i32, i32, i32
  }
  func.func @transform_11(%arg0: i32, %arg1: i32) -> (i32, i32, i32) {
    %c0_i32 = arith.constant 0 : i32
    %c0_i32_0 = arith.constant 0 : i32
    return %arg0, %arg1, %c0_i32 : i32, i32, i32
  }
}

</mosaic_0001>

<bundles_post_ra>
// kernel: tpu_custom_call.1
= control target key start
LH: loop header
LB: loop body
LE: loop exit
PB: predicated region body
PF: predicated region fallthrough
CT: control target
= control target key end

     0   :  { %s5287_s0 = inlined_call_operand.hbm [shape: bf16[2,128,128], index: 0, kind: input, shape index: {}]   ;;  %s5288_s1 = inlined_call_operand.hbm [shape: bf16[2,8,128], index: 1, kind: input, shape index: {}]   ;;  %s5289_s2 = inlined_call_operand.hbm [shape: bf16[128,128], index: 2, kind: input, shape index: {}]   ;;  %s5290_s3 = inlined_call_operand.vmem [shape: f32[1,128], index: 3, kind: input, shape index: {}]   ;;  %s5291_s4 = inlined_call_operand.hbm [shape: bf16[128,128], index: 4, kind: input, shape index: {}]   ;;  %s5292_s5 = inlined_call_operand.vmem [shape: f32[1,128], index: 5, kind: input, shape index: {}]   ;;  %s5293_s6 = inlined_call_operand.vmem [shape: f32[1,128], index: 6, kind: input, shape index: {}]   ;;  %s5294_s7 = inlined_call_operand.<no memory space> [shape: f32[1], index: 7, kind: input, shape index: {}]   ;;  %s5295_s8 = inlined_call_operand.hbm [shape: bf16[128,128], index: 8, kind: input, shape index: {}]   ;;  %s5296_s9 = inlined_call_operand.vmem [shape: f32[1,128], index: 9, kind: input, shape index: {}]   ;;  %s5297_s10 = inlined_call_operand.hbm [shape: f32[2,8,128], index: 10, kind: output, shape index: {0}]   ;;  %s5298_s11 = inlined_call_operand.hbm [shape: f32[2,8,128], index: 11, kind: output, shape index: {1}]  }
   0x1   :  { %5310 = sst [smem:[#allocation25_spill]] %s5287_s0 }
   0x2   :  { %5311 = sst [smem:[#allocation26_spill]] %s5289_s2 }
   0x3   :  { %5312 = sst [smem:[#allocation27_spill]] %s5291_s4 }
   0x4   :  { %5313 = sst [smem:[#allocation28_spill]] %s5295_s8 }
   0x5   :  { %5314 = sst [smem:[#allocation29_spill]] %s5296_s9 }
   0x6   :  { %5315 = sst [smem:[#allocation30_spill]] %s5297_s10 }
   0x7   :  { %5316 = sst [smem:[#allocation31_spill]] %s5298_s11 }
   0x8   :  { %17 = sst [smem:[#allocation3]] %s5294_s7 }
   0x9   :  { %18 = vsyncpa [#allocation5], 0 }
   0xa   :  { %20 = vsyncpa [#allocation5 + $0x1], 0 }
   0xb   :  { %21 = vsyncpa [#allocation8], 0 }
   0xc   :  { %23 = vsyncpa [#allocation8 + $0x1], 0 }
   0xd   :  { %24 = vsyncpa [#allocation11], 0 }
   0xe   :  { %25 = vsyncpa [#allocation6], 0 }
   0xf   :  { %27 = vsyncpa [#allocation6 + $0x1], 0 }
  0x10   :  { %28 = vsyncpa [#allocation15], 0 }
  0x11   :  { %30 = vsyncpa [#allocation15 + $0x1], 0  ;;  %s3674_s19 = smov 0   ;;  %s3676_s20 = smov 0  }
  0x12   :  { %s3678_s21 = smov 0   ;;  %s3680_s22 = smov 0  }
  0x13   :  { %s3682_s23 = smov 0   ;;  %s3684_s7 = smov 0  }
  0x14 LB: > { %5317 = sst [smem:[#allocation22_spill]] %s3577_s19  ;;  %s3705_s24 = sadd.s32 4294967295, %s3597_s7   ;;  %s3597_s7 = sphi %s3684_s7, %s36_s7   ;;  %s3593_s23 = sphi %s3682_s23, %s5354_s23   ;;  %s3589_s22 = sphi %s3680_s22, %s5353_s22   ;;  %s3585_s21 = sphi %s3678_s21, %s5352_s21   ;;  %s3581_s20 = sphi %s3676_s20, %s5351_s20   ;;  %s3577_s19 = sphi %s3674_s19, %s5350_s19  }
  0x15   : > { %5318 = sst [smem:[#allocation23_spill]] %s3589_s22  ;;  %s2968_s25 = sadd.s32 4294967294, %s3597_s7  }
  0x16   : > { %p68_p0 = scmp.ne.s32.totalorder %s3581_s20, %s3577_s19  ;;  %p5301_p1 = scmp.eq.s32.totalorder %s3705_s24, 0 }
  0x17   : > { %p296_p3 = scmp.eq.s32.totalorder %s2968_s25, 1  ;;  %p2969_p5 = scmp.ge.s32.totalorder %s3597_s7, 1 }
  0x18   : > { %p3714_p4 = por %p5301_p1, %p68_p0  ;;  %p331_p7 = scmp.lt.s32.totalorder %s3597_s7, 3 }
  0x19   : > { %p3719_p6 = por %p296_p3, %p68_p0  ;;  %s3599_s29 = smov [#allocation9]  }
  0x1a   : > { %s5319_s26 = scalar_select %p3714_p4, 1, 0 }
  0x1b   : > { %s5320_s27 = scalar_select %p3719_p6, 1, 0 }
  0x1c   : > { %p3724_p8 = pnand %p2969_p5, %p331_p7  ;;  %s343_s30 = sshll.u32 %s3599_s29, 4  ;;  %s3728_s30 = int_to_ptr.vmem [resolvable:$true] %s343_s30 }
  0x1d   : > { %5321 = sst [smem:[#allocation24_spill]] %s5320_s27  ;;  %s3600_s13 = smov [#allocation10]  }
  0x1e   : > { %s5322_s28 = scalar_select %p3724_p8, 1, 0 }
  0x1f   : > { %p3193_p9 = pneg %p3724_p8  ;;  %s359_s14 = sshll.u32 %s3600_s13, 4  ;;  %s3739_s14 = int_to_ptr.vmem [resolvable:$true] %s359_s14 }
  0x20   : > { %s3601_s15 = smov [#allocation12]   ;;  %s5324_s2 = sld [smem:[#allocation26_spill]] }
  0x21   : > { %p3735_p11 = pnand %p3193_p9, %p5301_p1  ;;  %s3741_s16 = sshll.u32 %s3601_s15, 4  ;;  %s382_s16 = int_to_ptr.vmem [resolvable:$true] %s3741_s16 }
  0x23   : > { %p3751_p13 = pneg %p3735_p11 }
  0x26   : > { %s3327_s25 = scalar_lea.hbm %s5324_s2, 1024 }
  0x27   : > { %p3328_p12 = scmp.ne.s32.totalorder %s5324_s2, %s3327_s25  ;;  %p3334_p5 = scmp.lt.u32.totalorder %s3327_s25, %s5324_s2 }
  0x29   : > { %p3330_p0 = pnand %p3751_p13, %p3328_p12 }
  0x2b   : > { %p3331_p3 = pneg %p3330_p0 }
  0x2d   : > { %p3336_p7 = pnand %p3334_p5, %p3331_p3 }
  0x2f   : > { %3339 = shalt.err (!%p3336_p7)
}
  0x30   : > { %s3340_s27 = scalar_lea.vmem %s3728_s30, 1024  ;;  %p3348_p2 = scmp.lt.s32.totalorder %s3728_s30, %s3728_s30 }
  0x31   : > { %p3341_p9 = scmp.ne.s32.totalorder %s3728_s30, %s3340_s27  ;;  %p3349_p6 = scmp.lt.s32.totalorder %s3340_s27, %s3340_s27 }
  0x33   : > { %p3343_p10 = pnand %p3341_p9, %p3751_p13  ;;  %p3350_p12 = por %p3349_p6, %p3348_p2 }
  0x35   : > { %p3344_p1 = pneg %p3343_p10 }
  0x37   : > { %p3351_p0 = pnand %p3350_p12, %p3344_p1 }
  0x39   : > { %3354 = shalt.err (!%p3351_p0)
}
  0x3a   : > { %s5307_s17 = smov 64   ;;  %s5308_s18 = smov 4  }
  0x3b   : > { %3196 = dma.hbm_to_vmem [thread:$0]  (!%p3735_p11), %s5324_s2, 1024, %s3728_s30, [#allocation8], %s5307_s17, %s5307_s17, %s5308_s18  }
  0x3c   : > { %s5326_s4 = sld [smem:[#allocation27_spill]] }
  0x42   : > { %s3355_s27 = scalar_lea.hbm %s5326_s4, 1024 }
  0x43   : > { %p3356_p1 = scmp.ne.s32.totalorder %s5326_s4, %s3355_s27  ;;  %p3362_p10 = scmp.lt.u32.totalorder %s3355_s27, %s5326_s4 }
  0x45   : > { %p3358_p2 = pnand %p3356_p1, %p3751_p13 }
  0x47   : > { %p3359_p6 = pneg %p3358_p2 }
  0x49   : > { %p3364_p3 = pnand %p3362_p10, %p3359_p6 }
  0x4b   : > { %3367 = shalt.err (!%p3364_p3)
}
  0x4c   : > { %s3368_s30 = scalar_lea.vmem %s3739_s14, 1024  ;;  %p3376_p12 = scmp.lt.s32.totalorder %s3739_s14, %s3739_s14 }
  0x4d   : > { %p3369_p5 = scmp.ne.s32.totalorder %s3739_s14, %s3368_s30  ;;  %p3377_p0 = scmp.lt.s32.totalorder %s3368_s30, %s3368_s30 }
  0x4f   : > { %p3371_p7 = pnand %p3369_p5, %p3751_p13  ;;  %p3378_p1 = por %p3377_p0, %p3376_p12 }
  0x51   : > { %p3372_p9 = pneg %p3371_p7 }
  0x53   : > { %p3379_p2 = pnand %p3378_p1, %p3372_p9 }
  0x55   : > { %3382 = shalt.err (!%p3379_p2)
}
  0x56   : > { %3199 = dma.hbm_to_vmem [thread:$0]  (!%p3735_p11), %s5326_s4, 1024, %s3739_s14, [#allocation11], %s5307_s17, %s5307_s17, %s5308_s18  }
  0x57   : > { %s5327_s8 = sld [smem:[#allocation28_spill]] }
  0x5d   : > { %s3383_s25 = scalar_lea.hbm %s5327_s8, 1024 }
  0x5e   : > { %p3384_p6 = scmp.ne.s32.totalorder %s5327_s8, %s3383_s25  ;;  %p3390_p5 = scmp.lt.u32.totalorder %s3383_s25, %s5327_s8 }
  0x60   : > { %p3386_p10 = pnand %p3384_p6, %p3751_p13 }
  0x62   : > { %p3387_p3 = pneg %p3386_p10 }
  0x64   : > { %p3392_p7 = pnand %p3390_p5, %p3387_p3 }
  0x66   : > { %3395 = shalt.err (!%p3392_p7)
}
  0x67   : > { %s3396_s30 = scalar_lea.vmem %s382_s16, 1024  ;;  %p3404_p1 = scmp.lt.s32.totalorder %s382_s16, %s382_s16 }
  0x68   : > { %p3397_p9 = scmp.ne.s32.totalorder %s382_s16, %s3396_s30  ;;  %p3405_p2 = scmp.lt.s32.totalorder %s3396_s30, %s3396_s30 }
  0x6a   : > { %p3399_p12 = pnand %p3397_p9, %p3751_p13  ;;  %p3406_p4 = por %p3405_p2, %p3404_p1 }
  0x6c   : > { %p3400_p0 = pneg %p3399_p12 }
  0x6e   : > { %p3407_p8 = pnand %p3406_p4, %p3400_p0 }
  0x70   : > { %3410 = shalt.err (!%p3407_p8)
}
  0x71   : > { %3202 = dma.hbm_to_vmem [thread:$0]  (!%p3735_p11), %s5327_s8, 1024, %s382_s16, [#allocation11], %s5307_s17, %s5307_s17, %s5308_s18  }
  0x72   : > { %s55_s19 = sadd.s32 1, %s3585_s21  ;;  %s48_s12 = sadd.s32 1, %s3593_s23 }
  0x73   : > { %p62_p4 = scmp.ne.s32.totalorder %s3585_s21, %s3581_s20  ;;  %p50_p8 = scmp.ge.s32.totalorder %s48_s12, 2 }
  0x74   : > { %p63_p13 = scmp.eq.s32.totalorder %s3597_s7, 0  ;;  %p5328_p6 = scmp.eq.s32.totalorder %s3705_s24, 1 }
  0x75   : > { %p3220_p3 = scmp.lt.s32.totalorder %s3597_s7, 2  ;;  %s5356_s12 = smov (%p50_p8, %s48_s12), 0 }
  0x76   : > { %p3830_p10 = por %p5328_p6, %p62_p4  ;;  %p64_p5 = por %p63_p13, %p62_p4 }
  0x77   : > { %s3838_s11 = sand.u32 1, %s3585_s21   ;;  %s52_s16 = ssub.s32 %s3593_s23, %s5356_s12 }
  0x78   : > { %s5329_s10 = scalar_select %p3830_p10, 1, 0 }
  0x79   : > { %p53_p11 = scmp.eq.s32.totalorder %s52_s16, 0  ;;  %s2974_s22 = sshll.u32 %s3838_s11, 6 }
  0x7a   : > { %s3037_s25 = sshll.u32 %s3593_s23, 10  ;;  %s5330_s0 = sld [smem:[#allocation25_spill]] }
  0x7b   : > { %s3845_s29 = scalar_select %p53_p11, %s3585_s21, %s55_s19  }
  0x7c   : > { %s402_s30 = scalar_lea.vmem [#allocation4], %s2974_s22  ;;  %p3856_p7 = pnand %p3220_p3, %p64_p5 }
  0x7d   : > { %s409_s14 = sshll.u32 %s402_s30, 4  ;;  %s2977_s16 = sshll.u32 %s3838_s11, 2  ;;  %s3852_s14 = int_to_ptr.vmem [resolvable:$true] %s409_s14 }
  0x7e   : > { %s399_s13 = scalar_lea.sflag [#allocation5], %s3838_s11  ;;  %p3413_p12 = pneg %p3856_p7 }
  0x80   : > { %s3850_s27 = scalar_lea.hbm %s5330_s0, %s3037_s25  ;;  %s3416_s30 = scalar_lea.hbm %s5330_s0, 2048 }
  0x81   : > { %s3411_s25 = scalar_lea.hbm %s3850_s27, 1024  ;;  %p3417_p2 = scmp.lt.u32.totalorder %s3850_s27, %s5330_s0 }
  0x82   : > { %p3412_p9 = scmp.ne.s32.totalorder %s3850_s27, %s3411_s25  ;;  %p3418_p4 = scmp.lt.u32.totalorder %s3416_s30, %s3411_s25 }
  0x83   : > { %p3420_p13 = scmp.lt.u32.totalorder %s3411_s25, %s3850_s27 }
  0x84   : > { %p3414_p0 = pnand %p3413_p12, %p3412_p9  ;;  %p3419_p8 = por %p3418_p4, %p3417_p2 }
  0x86   : > { %p3415_p1 = pneg %p3414_p0  ;;  %p3421_p6 = por %p3420_p13, %p3419_p8 }
  0x88   : > { %p3422_p3 = pnand %p3421_p6, %p3415_p1 }
  0x8a   : > { %3425 = shalt.err (!%p3422_p3)
}
  0x8b   : > { %s3426_s19 = scalar_lea.vmem %s3852_s14, 1024  ;;  %s3604_s22 = smov [#allocation4]  }
  0x8c   : > { %p3427_p5 = scmp.ne.s32.totalorder %s3852_s14, %s3426_s19  ;;  %s3431_s15 = sshll.u32 %s3604_s22, 4  ;;  %s3432_s15 = int_to_ptr.vmem [resolvable:$false] %s3431_s15 }
  0x8d   : > { %s3433_s17 = scalar_lea.vmem %s3432_s15, 2048  ;;  %p3434_p0 = scmp.lt.s32.totalorder %s3852_s14, %s3432_s15 }
  0x8e   : > { %p3429_p11 = pnand %p3427_p5, %p3413_p12  ;;  %p3435_p2 = scmp.lt.s32.totalorder %s3433_s17, %s3426_s19 }
  0x90   : > { %p3430_p9 = pneg %p3429_p11  ;;  %p3436_p4 = por %p3435_p2, %p3434_p0 }
  0x92   : > { %p3437_p8 = pnand %p3436_p4, %p3430_p9 }
  0x94   : > { %3440 = shalt.err (!%p3437_p8)
}
  0x95   : > { %s5332_s18 = smov 4   ;;  %s5333_s25 = smov 64  }
  0x96   : > { %3206 = dma.hbm_to_vmem [thread:$0]  (!%p3856_p7), %s3850_s27, 1024, %s3852_s14, %s399_s13, %s5333_s25, %s5333_s25, %s5332_s18  }
  0x97   : > { %s2978_s30 = sshll.u32 %s3593_s23, 6  ;;  %s423_s17 = scalar_lea.vmem [#allocation7], %s2977_s16 }
  0x98   : > { %s3897_s15 = scalar_lea.hbm %s5288_s1, %s2978_s30  ;;  %s431_s0 = sshll.u32 %s423_s17, 4  ;;  %s432_s0 = int_to_ptr.vmem [resolvable:$true] %s431_s0 }
  0x99   : > { %s5334_s2 = sand.u32 1, %s3597_s7   ;;  %s3441_s8 = scalar_lea.hbm %s3897_s15, 64 }
  0x9a   : > { %s420_s4 = scalar_lea.sflag [#allocation8], %s5334_s2  ;;  %p3442_p1 = scmp.ne.s32.totalorder %s3897_s15, %s3441_s8 }
  0x9b   : > { %s3446_s13 = scalar_lea.hbm %s5288_s1, 128  ;;  %p3447_p3 = scmp.lt.u32.totalorder %s3897_s15, %s5288_s1 }
  0x9c   : > { %p3444_p13 = pnand %p3442_p1, %p3413_p12  ;;  %p3448_p5 = scmp.lt.u32.totalorder %s3446_s13, %s3441_s8 }
  0x9d   : > { %p3450_p9 = scmp.lt.u32.totalorder %s3441_s8, %s3897_s15 }
  0x9e   : > { %p3445_p6 = pneg %p3444_p13  ;;  %p3449_p11 = por %p3448_p5, %p3447_p3 }
  0xa0   : > { %p3451_p0 = por %p3450_p9, %p3449_p11 }
  0xa2   : > { %p3452_p2 = pnand %p3451_p0, %p3445_p6 }
  0xa4   : > { %3455 = shalt.err (!%p3452_p2)
}
  0xa5   : > { %s3456_s2 = scalar_lea.vmem %s432_s0, 64  ;;  %s3605_s16 = smov [#allocation7]  }
  0xa6   : > { %p3457_p4 = scmp.ne.s32.totalorder %s432_s0, %s3456_s2  ;;  %s3461_s25 = sshll.u32 %s3605_s16, 4  ;;  %s3462_s25 = int_to_ptr.vmem [resolvable:$false] %s3461_s25 }
  0xa7   : > { %s3463_s30 = scalar_lea.vmem %s3462_s25, 128  ;;  %p3464_p13 = scmp.lt.s32.totalorder %s432_s0, %s3462_s25 }
  0xa8   : > { %p3459_p8 = pnand %p3457_p4, %p3413_p12  ;;  %p3465_p10 = scmp.lt.s32.totalorder %s3463_s30, %s3456_s2 }
  0xaa   : > { %p3460_p1 = pneg %p3459_p8  ;;  %p3466_p3 = por %p3465_p10, %p3464_p13 }
  0xac   : > { %p3467_p5 = pnand %p3466_p3, %p3460_p1 }
  0xae   : > { %3470 = shalt.err (!%p3467_p5)
}
  0xaf   : > { %3209 = dma.hbm_to_vmem [thread:$0]  (!%p3856_p7), %s3897_s15, 64, %s432_s0, %s420_s4  }
  0xb0   : > { %p5335_p6 = scmp.ne.s32.totalorder %s5322_s28, 0 }
  0xb1   : > { %s3925_s8 = sand.u32 (!%p5335_p6), 1, %s3581_s20   ;;  %p5336_p10 = scmp.ne.s32.totalorder (!%p5335_p6), %s5319_s26, 0 }
  0xb2   : > { %440 = sbr.rel (%p5335_p6) target bundleno = 1615 (0x64f), region = 60  ;;  %s2980_s22 = sshll.u32 (!%p5335_p6), %s3925_s8, 6 }
  0xb3   : > { %s443_s19 = scalar_lea.sflag (!%p5335_p6), [#allocation5], %s3925_s8  ;;  %s3929_s17 = scalar_lea.vmem (!%p5335_p6), [#allocation4], %s2980_s22 }
  0xb9   : > { %3552 = dma.done.wait (%p5336_p10), %s443_s19, 1024  }
  0xba   : > { %3554 = vsyncadd (%p5336_p10), %s443_s19, 4294966272  ;;  %s451_s0 = sand.u32 1, %s3705_s24   ;;  %s2981_s4 = sshll.u32 %s3925_s8, 2 }
  0xbb   : > { %s452_s28 = scalar_lea.sflag [#allocation8], %s451_s0  ;;  %s3937_s9 = scalar_lea.vmem [#allocation7], %s2981_s4 }
  0xbc   : > { %3556 = dma.done.wait (%p5336_p10), %s452_s28, 64  }
  0xbd   : > { %3558 = vsyncadd (%p5336_p10), %s452_s28, 4294967232  ;;  %p5337_p7 = scmp.eq.s32.totalorder %s3705_s24, 0 }
  0xbf   : > { %3560 = dma.done.wait (%p5337_p7), [#allocation8], 1024   ;;  %p5338_p12 = pmov %p5337_p7 }
  0xc0   : > { %p5339_p11 = pmov %p5337_p7 }
  0xc1   : > { %3562 = vsyncadd (%p5338_p12), [#allocation8], 4294966272 }
  0xc2   : > { %3564 = dma.done.wait (%p5339_p11), [#allocation11], 2048   ;;  %p5340_p9 = pmov %p5337_p7 }
  0xc3   : > { %v3606_v0 = vmov 0.0   ;;  %vm3607_vm0 = vmmov 0   ;;  %v3281_v1 = vld [vmem:[#allocation10] sm:$0xff]   ;;  %v3283_v3 = vld [vmem:[#allocation10 + $0x8] sm:$0xff]   ;;  %v3286_v5 = vld [vmem:[#allocation9 + $0x10] sm:$0xff]   ;;  %v634_v28 = vlaneseq  ;;  %s680_s11 = sld [smem:[#allocation3]] }
  0xc4   : > { %3566 = vsyncadd (%p5340_p9), [#allocation11], 4294965248  ;;  %3081 = vmatprep.subr.bf16.mxu0 %v3606_v0  ;;  %3097 = vmatprep.mubr.msk.bf16.mxu0 %vm3607_vm0, %v3606_v0  ;;  %v3282_v2 = vld [vmem:[#allocation9] sm:$0xff]   ;;  %v3284_v4 = vld [vmem:[#allocation9 + $0x8] sm:$0xff]   ;;  %v3608_v26 = vmov 1966171168  }
  0xc5   : > { %3082 = vmatpush3.bf16.msra.mxu0 %v3281_v1  ;;  %3101 = vmatprep.subr.bf16.mxu1 %v3282_v2  ;;  %v3285_v6 = vld [vmem:[#allocation10 + $0x10] sm:$0xff]   ;;  %v3288_v7 = vld [vmem:[#allocation9 + $0x18] sm:$0xff]   ;;  %v3290_v9 = vld [vmem:[#allocation9 + $0x20] sm:$0xff]   ;;  %v632_v27 = vunpack.c.l.s4 %v3608_v26  ;;  %v3977_v30 = vshrl.u32 %v634_v28, 7  ;;  %vm1867_vm1 = vcmask 130112   ;;  %vm1874_vm2 = vcmask 195712  }
  0xc6   : > { %3083 = vmatprep.subr.bf16.mxu0 %v3606_v0  ;;  %3102 = vmatpush3.bf16.msra.mxu1 %v3282_v2  ;;  %v3287_v8 = vld [vmem:[#allocation10 + $0x18] sm:$0xff]   ;;  %v3289_v10 = vld [vmem:[#allocation10 + $0x20] sm:$0xff]   ;;  %v3292_v11 = vld [vmem:[#allocation9 + $0x28] sm:$0xff]   ;;  %vm1881_vm3 = vcmask 261312   ;;  %vm1888_vm4 = vcmask 326912   ;;  %vm1895_vm5 = vcmask 392512  }
  0xc7   : > { %3103 = vmatprep.subr.bf16.mxu1 %v3284_v4  ;;  %v3297_v12 = vld [vmem:[%s3929_s17] sm:$0xff]   ;;  %v3291_v13 = vld [vmem:[#allocation10 + $0x28] sm:$0xff]   ;;  %v3294_v14 = vld [vmem:[#allocation9 + $0x30] sm:$0xff]   ;;  %v633_v29 = vunpack.c.0.s8 %v632_v27  ;;  %v3992_v43 = vsub.s32 0, %v3977_v30  ;;  %vm1902_vm6 = vcmask 458112   ;;  %vm1909_vm7 = vcmask 523712  }
  0xc8   : > { %3117 = vmatprep.mubr.bf16.mxu1 %v3297_v12  ;;  %v3293_v15 = vld [vmem:[#allocation10 + $0x30] sm:$0xff]   ;;  %v3295_v16 = vld [vmem:[#allocation10 + $0x38] sm:$0xff]   ;;  %v3298_v19 = vld [vmem:[%s3929_s17 + $0x8] sm:$0xff]   ;;  %vm1916_vm8 = vcmask 589312   ;;  %vm1923_vm9 = vcmask 654912   ;;  %vm1930_vm10 = vcmask 720512  }
  0xc9   : > { %3084 = vmatpush3.bf16.msra.mxu0 %v3283_v3  ;;  %v3296_v17 = vld [vmem:[#allocation9 + $0x38] sm:$0xff]   ;;  %v3299_v20 = vld [vmem:[%s3929_s17 + $0x10] sm:$0xff]   ;;  %v3300_v21 = vld [vmem:[%s3929_s17 + $0x18] sm:$0xff]   ;;  %v3983_v32 = vsub.s32 %v633_v29, %v3977_v30  ;;  %vm1937_vm11 = vcmask 786112   ;;  %vm1944_vm12 = vcmask 851712   ;;  %vm1951_vm13 = vcmask 917312  }
  0xca   : > { %3085 = vmatprep.subr.bf16.mxu0 %v3606_v0  ;;  %3104 = vmatpush3.bf16.msra.mxu1 %v3284_v4  ;;  %v517_v18 = vld [vmem:[%s3937_s9] sm:$0xf]  ;;  %v3302_v23 = vld [vmem:[%s3929_s17 + $0x28] sm:$0xff]   ;;  %v3303_v24 = vld [vmem:[%s3929_s17 + $0x30] sm:$0xff]   ;;  %vm1958_vm14 = vcmask 982912   ;;  %vm1965_vm15 = vcmask 1048512  }
  0xcb   : > { %3105 = vmatprep.subr.bf16.mxu1 %v3286_v5  ;;  %v3301_v22 = vld [vmem:[%s3929_s17 + $0x20] sm:$0xff]   ;;  %v3304_v25 = vld [vmem:[%s3929_s17 + $0x38] sm:$0xff]   ;;  %s5341_s16 = sld [smem:[#allocation23_spill]]  ;;  %s2985_s25 = sshll.u32 %s3925_s8, 3 }
  0xcc   : > { %v2987_v31 = vld [vmem:[%s5292_s5] ss:$0 sm:$0xff]  ;;  %s515_s30 = scalar_lea.vmem [#allocation14], %s2985_s25  ;;  %s5342_s0 = sld [smem:[#allocation31_spill]] }
  0xcd   : > { %3086 = vmatpush3.bf16.msra.mxu0 %v3285_v6  ;;  %v3989_v41 = vld [vmem:[%s5290_s3] ss:$0 sm:$0xff]  ;;  %s2803_s28 = sshll.u32 %s515_s30, 4  ;;  %s2775_s24 = scalar_lea.sflag [#allocation15], %s3925_s8  ;;  %s2804_s28 = int_to_ptr.vmem [resolvable:$true] %s2803_s28 }
  0xce   : > { %3087 = vmatprep.subr.bf16.mxu0 %v3606_v0  ;;  %3106 = vmatpush3.bf16.msra.mxu1 %v3286_v5  ;;  %v4031_v62 = vld [vmem:[%s5293_s6] ss:$0 sm:$0xff]  ;;  %s3471_s26 = scalar_lea.vmem %s2804_s28, 128  ;;  %p5343_p2 = scmp.ne.s32.totalorder %s5329_s10, 0 }
  0xcf   : > { %3107 = vmatprep.subr.bf16.mxu1 %v3288_v7  ;;  %p3472_p0 = scmp.ne.s32.totalorder %s2804_s28, %s3471_s26  ;;  %s3609_s15 = smov [#allocation14]  }
  0xd0   : > { %s3475_s27 = sshll.u32 %s3609_s15, 4  ;;  %s3476_s27 = int_to_ptr.vmem [resolvable:$false] %s3475_s27 }
  0xd1   : > { %3088 = vmatpush3.bf16.msra.mxu0 %v3287_v8  ;;  %s3033_s22 = sshll.u32 %s5341_s16, 7  ;;  %p3473_p4 = pnand %p3472_p0, %p5343_p2 }
  0xd2   : > { %3089 = vmatprep.subr.bf16.mxu0 %v3606_v0  ;;  %3108 = vmatpush3.bf16.msra.mxu1 %v3288_v7  ;;  %s5207_s4 = scalar_lea.hbm %s5342_s0, %s3033_s22  ;;  %s3477_s14 = scalar_lea.vmem %s3476_s27, 256 }
  0xd3   : > { %3109 = vmatprep.subr.bf16.mxu1 %v3290_v9  ;;  %p3474_p8 = pneg %p3473_p4  ;;  %p3478_p1 = scmp.lt.s32.totalorder %s2804_s28, %s3476_s27 }
  0xd4   : > { %p3479_p13 = scmp.lt.s32.totalorder %s3477_s14, %s3471_s26 }
  0xd5   : > { %3090 = vmatpush3.bf16.msra.mxu0 %v3289_v10 }
  0xd6   : > { %3091 = vmatprep.subr.bf16.mxu0 %v3606_v0  ;;  %3110 = vmatpush3.bf16.msra.mxu1 %v3290_v9  ;;  %p3480_p3 = por %p3479_p13, %p3478_p1 }
  0xd7   : > { %3111 = vmatprep.subr.bf16.mxu1 %v3292_v11 }
  0xd8   : > { %p3481_p5 = pnand %p3480_p3, %p3474_p8 }
  0xd9   : > { %3092 = vmatpush3.bf16.msra.mxu0 %v3291_v13 }
  0xda   : > { %3093 = vmatprep.subr.bf16.mxu0 %v3606_v0  ;;  %3112 = vmatpush3.bf16.msra.mxu1 %v3292_v11 }
  0xdb   : > { %3113 = vmatprep.subr.bf16.mxu1 %v3294_v14 }
  0xdd   : > { %3094 = vmatpush3.bf16.msra.mxu0 %v3293_v15 }
  0xde   : > { %3095 = vmatprep.subr.bf16.mxu0 %v3606_v0  ;;  %3114 = vmatpush3.bf16.msra.mxu1 %v3294_v14 }
  0xdf   : > { %3115 = vmatprep.subr.bf16.mxu1 %v3296_v17 }
  0xe1   : > { %3096 = vmatpush3.bf16.msra.mxu0 %v3295_v16 }
  0xe2   : > { %3133 = vmatprep.subr.bf16.mxu0 %v3606_v0  ;;  %3116 = vmatpush3.bf16.msra.mxu1 %v3296_v17 }
  0xe3   : > { %3153 = vmatprep.subr.bf16.mxu1 %v3606_v0 }
  0xe4   : > { %3098 = vmatmul.mubr.bf16.vlgmr.msra.gmra.mrb[0].mxu0 %v517_v18 }
  0xe5   : > { %3149 = vmatprep.mubr.msk.bf16.mxu0 %vm3607_vm0, %v3606_v0  ;;  %3118 = vmatmul.mubr.bf16.vlgmr.msra.gmra.mrb[0].mxu1 %v3298_v19 }
  0xe6   : > { %3121 = vmatprep.mubr.bf16.mxu1 %v3299_v20 }
  0xed   : > { %3122 = vmatmul.mubr.bf16.gmra.mrb[4].mxu1 %v3300_v21 }
  0xee   : > { %3125 = vmatprep.mubr.bf16.mxu1 %v3301_v22 }
  0xf5   : > { %3126 = vmatmul.mubr.bf16.gmra.mrb[8].mxu1 %v3302_v23 }
  0xf6   : > { %3129 = vmatprep.mubr.bf16.mxu1 %v3303_v24 }
  0xfd   : > { %3130 = vmatmul.mubr.bf16.gmra.mrb[12].mxu1 %v3304_v25 }
  0xfe   : > { %3169 = vmatprep.mubr.msk.bf16.mxu1 %vm3607_vm0, %v3606_v0  ;;  %vm2520_vm0 = vcmask 1041409  }
 0x1b7   : > { %v623_v33 = vpop.f32.mrb[0].mxu0 }
 0x1b8   : > { %v624_v34 = vadd.f32 %v2987_v31, %v623_v33  ;;  %v3099_v35 = vpop.f32.mrb[1].mxu0  ;;  %v3119_v37 = vpop.f32.mrb[0].mxu1 }
 0x1b9   : > { %v626_v36 = vpop.f32.mrb[2].mxu0  ;;  %v850_v42 = vpop.f32.mrb[1].mxu1  ;;  %v4016_v56 = vadd.f32 %v3119_v37, %v3989_v41 }
 0x1ba   : > { %v630_v38 = vcombine.high %v624_v34, %v624_v34  ;;  %v637_v39 = vrot.slane %v624_v34, %v3983_v32  ;;  %v3100_v40 = vpop.f32.mrb[3].mxu0  ;;  %v3120_v44 = vpop.f32.mrb[2].mxu1  ;;  %v3997_v49 = vadd.f32 %v3989_v41, %v850_v42 }
 0x1bb   : > { %v853_v48 = vpop.f32.mrb[3].mxu1  ;;  %v4034_v1 = vadd.f32 %v3120_v44, %v3989_v41 }
 0x1bc   : > { %v644_v45 = vrot.slane %v630_v38, %v3983_v32  ;;  %v645_v46 = vcombine.high %v637_v39, %v637_v39  ;;  %v653_v47 = vrot.slane %v637_v39, %v3983_v32  ;;  %v4000_v50 = vadd.f32 %v3989_v41, %v853_v48 }
 0x1be   : > { %v646_v51 = vcombine.high %v644_v45, %v644_v45  ;;  %v4003_v52 = vrot.slane %v645_v46, %v3983_v32  ;;  %v4006_v53 = vrot.slane %v653_v47, %v3992_v43  ;;  %v675_v63 = vcombine.high %v653_v47, %v653_v47 }
 0x1bf   : > { %v4071_v31 = vrot.slane %v644_v45, %v3983_v32 }
 0x1c0   : > { %v4009_v54 = vrot.slane %v646_v51, %v3983_v32  ;;  %v4013_v55 = vrot.slane %v4003_v52, %v3992_v43  ;;  %v4018_v57 = vpop.f32.mrb[4].mxu1  ;;  %v953_v58 = vadd.f32 %v4006_v53, %v3997_v49  ;;  %v954_v59 = vadd.f32 %v4006_v53, %v4000_v50 }
 0x1c1   : > { %v4026_v61 = vpop.f32.mrb[5].mxu1  ;;  %v955_v13 = vadd.f32 %v4006_v53, %v4016_v56  ;;  %v4053_v14 = vrot.slane %v675_v63, %v3992_v43  ;;  %v956_v21 = vadd.f32 %v4006_v53, %v4034_v1  ;;  %v4087_v42 = vrot.slane %v4071_v31, %v3992_v43 }
 0x1c2   : > { %v678_v60 = vcombine.high %v4009_v54, %v4009_v54  ;;  %v3124_v2 = vpop.f32.mrb[6].mxu1  ;;  %v1081_v3 = vmax.f32 %v953_v58, 0.0  ;;  %v969_v4 = vadd.f32 %v4013_v55, %v3997_v49  ;;  %v1082_v8 = vmax.f32 %v954_v59, 0.0 }
 0x1c3   : > { %v4042_v6 = vadd.f32 %v3124_v2, %v3989_v41  ;;  %v869_v7 = vpop.f32.mrb[7].mxu1  ;;  %v970_v9 = vadd.f32 %v4013_v55, %v4000_v50  ;;  %v971_v17 = vadd.f32 %v4013_v55, %v4016_v56  ;;  %v1083_v20 = vmax.f32 %v955_v13, 0.0 }
 0x1c4   : > { %v4039_v5 = vrot.slane %v678_v60, %v3992_v43  ;;  %v4047_v10 = vadd.f32 %v3989_v41, %v869_v7  ;;  %v1215_v11 = vmul.f32 %v4031_v62, %v1081_v3  ;;  %v1097_v12 = vmax.f32 %v969_v4, 0.0 }
 0x1c5   : > { %v1098_v16 = vmax.f32 %v970_v9, 0.0  ;;  %v1216_v19 = vmul.f32 %v4031_v62, %v1082_v8  ;;  %v1099_v27 = vmax.f32 %v971_v17, 0.0  ;;  %v986_v29 = vadd.f32 %v4053_v14, %v4000_v50 }
 0x1c6   : > { %1343 = vadd.xlane.f32.xlu0 %v1215_v11  ;;  %v1231_v15 = vmul.f32 %v4031_v62, %v1097_v12  ;;  %v1217_v36 = vmul.f32 %v4031_v62, %v1083_v20  ;;  %v1084_v37 = vmax.f32 %v956_v21, 0.0  ;;  %v985_v38 = vadd.f32 %v4053_v14, %v3997_v49 }
 0x1c7   : > { %v1232_v26 = vmul.f32 %v4031_v62, %v1098_v16  ;;  %v1233_v39 = vmul.f32 %v4031_v62, %v1099_v27  ;;  %v1114_v40 = vmax.f32 %v986_v29, 0.0  ;;  %v972_v32 = vadd.f32 %v4013_v55, %v4034_v1 }
 0x1c8   : > { %v3127_v18 = vpop.f32.mrb[8].mxu1  ;;  %1375 = vadd.xlane.f32.xlu1 %v1231_v15  ;;  %v1218_v45 = vmul.f32 %v4031_v62, %v1084_v37  ;;  %v1113_v46 = vmax.f32 %v985_v38, 0.0  ;;  %v987_v47 = vadd.f32 %v4053_v14, %v4016_v56  ;;  %v988_v2 = vadd.f32 %v4053_v14, %v4034_v1 }
 0x1c9   : > { %v4062_v22 = vadd.f32 %v3127_v18, %v3989_v41  ;;  %v882_v23 = vpop.f32.mrb[9].mxu1  ;;  %v1248_v60 = vmul.f32 %v4031_v62, %v1114_v40  ;;  %v1100_v63 = vmax.f32 %v972_v32, 0.0  ;;  %v1018_v11 = vadd.f32 %v4087_v42, %v4000_v50 }
 0x1ca   : > { %v4065_v24 = vadd.f32 %v3989_v41, %v882_v23  ;;  %v3128_v25 = vpop.f32.mrb[10].mxu1  ;;  %1345 = vadd.xlane.f32.xlu0 %v1216_v19  ;;  %v1247_v8 = vmul.f32 %v4031_v62, %v1113_v46  ;;  %v1115_v9 = vmax.f32 %v987_v47, 0.0  ;;  %v1116_v13 = vmax.f32 %v988_v2, 0.0 }
 0x1cb   : > { %v4074_v33 = vadd.f32 %v3128_v25, %v3989_v41  ;;  %v885_v34 = vpop.f32.mrb[11].mxu1  ;;  %v1234_v12 = vmul.f32 %v4031_v62, %v1100_v63  ;;  %v1017_v15 = vadd.f32 %v4087_v42, %v3997_v49  ;;  %v4115_v16 = vadd.f32 %v4018_v57, %v3989_v41 }
 0x1cc   : > { %v4077_v35 = vadd.f32 %v3989_v41, %v885_v34  ;;  %1377 = vadd.xlane.f32.xlu1 %v1232_v26  ;;  %v1249_v17 = vmul.f32 %v4031_v62, %v1115_v9  ;;  %v1146_v18 = vmax.f32 %v1018_v11, 0.0  ;;  %v1020_v19 = vadd.f32 %v4087_v42, %v4034_v1 }
 0x1cd   : > { %v1250_v20 = vmul.f32 %v4031_v62, %v1116_v13  ;;  %v1145_v21 = vmax.f32 %v1017_v15, 0.0  ;;  %v1019_v23 = vadd.f32 %v4087_v42, %v4016_v56  ;;  %v677_v25 = vcombine.high %v4003_v52, %v4003_v52 }
 0x1ce   : > { %1347 = vadd.xlane.f32.xlu0 %v1217_v36  ;;  %v1280_v57 = vmul.f32 %v4031_v62, %v1146_v18  ;;  %v1148_v26 = vmax.f32 %v1020_v19, 0.0  ;;  %v959_v27 = vadd.f32 %v4006_v53, %v4115_v16  ;;  %v975_v36 = vadd.f32 %v4013_v55, %v4115_v16 }
 0x1cf   : > { %v1279_v29 = vmul.f32 %v4031_v62, %v1145_v21  ;;  %v1147_v34 = vmax.f32 %v1019_v23, 0.0  ;;  %v4132_v37 = vrot.slane %v677_v25, %v3992_v43  ;;  %v4158_v11 = vadd.f32 %v4039_v5, %v4000_v50 }
 0x1d0   : > { %v3131_v44 = vpop.f32.mrb[12].mxu1  ;;  %1379 = vadd.xlane.f32.xlu1 %v1233_v39  ;;  %v1282_v52 = vmul.f32 %v4031_v62, %v1148_v26  ;;  %v1087_v38 = vmax.f32 %v959_v27, 0.0  ;;  %v991_v39 = vadd.f32 %v4053_v14, %v4115_v16  ;;  %v1103_v32 = vmax.f32 %v975_v36, 0.0 }
 0x1d1   : > { %v4093_v48 = vadd.f32 %v3131_v44, %v3989_v41  ;;  %v898_v51 = vpop.f32.mrb[13].mxu1  ;;  %v1281_v40 = vmul.f32 %v4031_v62, %v1147_v34  ;;  %v1023_v44 = vadd.f32 %v4087_v42, %v4115_v16  ;;  %v1001_v63 = vadd.f32 %v4132_v37, %v3997_v49 }
 0x1d2   : > { %v4096_v58 = vadd.f32 %v3989_v41, %v898_v51  ;;  %v3132_v59 = vpop.f32.mrb[14].mxu1  ;;  %1349 = vadd.xlane.f32.xlu0 %v1218_v45  ;;  %v4142_v45 = vadd.f32 %v3989_v41, %v4026_v61  ;;  %v1221_v46 = vmul.f32 %v4031_v62, %v1087_v38  ;;  %v1119_v47 = vmax.f32 %v991_v39, 0.0 }
 0x1d3   : > { %v4102_v3 = vadd.f32 %v3132_v59, %v3989_v41  ;;  %v901_v4 = vpop.f32.mrb[15].mxu1  ;;  %v1002_v51 = vadd.f32 %v4132_v37, %v4000_v50  ;;  %v1237_v59 = vmul.f32 %v4031_v62, %v1103_v32  ;;  %v4169_v18 = vadd.f32 %v4039_v5, %v3997_v49 }
 0x1d4   : > { %v4105_v7 = vadd.f32 %v3989_v41, %v901_v4  ;;  %1409 = vadd.xlane.f32.xlu1 %v1248_v60  ;;  %v1151_v60 = vmax.f32 %v1023_v44, 0.0  ;;  %v1253_v2 = vmul.f32 %v4031_v62, %v1119_v47  ;;  %v973_v41 = vadd.f32 %v4013_v55, %v4142_v45 }
 0x1d5   : > { %v1130_v4 = vmax.f32 %v1002_v51, 0.0  ;;  %v957_v9 = vadd.f32 %v4006_v53, %v4142_v45  ;;  %v4173_v19 = vrot.slane %v4009_v54, %v3992_v43  ;;  %v989_v23 = vadd.f32 %v4053_v14, %v4142_v45 }
 0x1d6   : > { %1407 = vadd.xlane.f32.xlu0 %v1247_v8  ;;  %v1285_v61 = vmul.f32 %v4031_v62, %v1151_v60  ;;  %v1129_v8 = vmax.f32 %v1001_v63, 0.0  ;;  %v1101_v15 = vmax.f32 %v973_v41, 0.0  ;;  %v4180_v25 = vadd.f32 %v4039_v5, %v4034_v1 }
 0x1d7   : > { %v1264_v13 = vmul.f32 %v4031_v62, %v1130_v4  ;;  %v1085_v21 = vmax.f32 %v957_v9, 0.0  ;;  %v1004_v54 = vadd.f32 %v4132_v37, %v4034_v1  ;;  %v4193_v34 = vadd.f32 %v4039_v5, %v4047_v10 }
 0x1d8   : > { %1381 = vadd.xlane.f32.xlu1 %v1234_v12  ;;  %v4162_v12 = vadd.f32 %v4039_v5, %v4016_v56  ;;  %v1235_v26 = vmul.f32 %v4031_v62, %v1101_v15  ;;  %v4200_v38 = vadd.f32 %v4039_v5, %v4115_v16  ;;  %v1033_v44 = vadd.f32 %v4173_v19, %v3997_v49 }
 0x1d9   : > { %v1219_v36 = vmul.f32 %v4031_v62, %v1085_v21  ;;  %v1132_v32 = vmax.f32 %v1004_v54, 0.0  ;;  %v1035_v41 = vadd.f32 %v4173_v19, %v4016_v56  ;;  %v1021_v9 = vadd.f32 %v4087_v42, %v4142_v45 }
 0x1da   : > { %1411 = vadd.xlane.f32.xlu0 %v1249_v17  ;;  %v1003_v17 = vadd.f32 %v4132_v37, %v4016_v56  ;;  %v1161_v60 = vmax.f32 %v1033_v44, 0.0  ;;  %v4239_v54 = vadd.f32 %v4039_v5, %v4065_v24 }
 0x1db   : > { %v1163_v15 = vmax.f32 %v1035_v41, 0.0  ;;  %v1149_v21 = vmax.f32 %v1021_v9, 0.0 }
 0x1dc   : > { %1413 = vadd.xlane.f32.xlu1 %v1250_v20  ;;  %v1263_v20 = vmul.f32 %v4031_v62, %v1129_v8  ;;  %v1131_v27 = vmax.f32 %v1003_v17, 0.0 }
 0x1de   : > { %1473 = vadd.xlane.f32.xlu0 %v1280_v57  ;;  %v676_v57 = vcombine.high %v4071_v31, %v4071_v31  ;;  %v1034_v31 = vadd.f32 %v4173_v19, %v4000_v50 }
 0x1e0   : > { %1471 = vadd.xlane.f32.xlu1 %v1279_v29  ;;  %v4189_v29 = vadd.f32 %v4039_v5, %v4142_v45  ;;  %v4203_v39 = vrot.slane %v676_v57, %v3992_v43  ;;  %v1162_v51 = vmax.f32 %v1034_v31, 0.0  ;;  %v1266_v43 = vmul.f32 %v4031_v62, %v1132_v32 }
 0x1e1   : > { %v1297_v57 = vmul.f32 %v4031_v62, %v1163_v15 }
 0x1e2   : > { %1477 = vadd.xlane.f32.xlu0 %v1282_v52  ;;  %v1117_v52 = vmax.f32 %v989_v23, 0.0  ;;  %v1049_v63 = vadd.f32 %v4203_v39, %v3997_v49  ;;  %v1050_v17 = vadd.f32 %v4203_v39, %v4000_v50  ;;  %v1051_v23 = vadd.f32 %v4203_v39, %v4016_v56 }
 0x1e3   : > { %v1283_v50 = vmul.f32 %v4031_v62, %v1149_v21  ;;  %v4246_v56 = vadd.f32 %v4039_v5, %v4074_v33  ;;  %v1052_v32 = vadd.f32 %v4203_v39, %v4034_v1 }
 0x1e4   : > { %1475 = vadd.xlane.f32.xlu1 %v1281_v40  ;;  %v1265_v40 = vmul.f32 %v4031_v62, %v1131_v27  ;;  %v1251_v47 = vmul.f32 %v4031_v62, %v1117_v52  ;;  %v1177_v8 = vmax.f32 %v1049_v63, 0.0  ;;  %v1036_v27 = vadd.f32 %v4173_v19, %v4034_v1 }
 0x1e5   : > { %v1007_v52 = vadd.f32 %v4132_v37, %v4115_v16  ;;  %v1039_v1 = vadd.f32 %v4173_v19, %v4115_v16 }
 0x1e6   : > { %1355 = vadd.xlane.f32.xlu0 %v1221_v46  ;;  %v4210_v46 = vadd.f32 %v4039_v5, %v4042_v6 }
 0x1e7   : > { %v1167_v9 = vmax.f32 %v1039_v1, 0.0 }
 0x1e8   : > { %1387 = vadd.xlane.f32.xlu1 %v1237_v59  ;;  %v1005_v59 = vadd.f32 %v4132_v37, %v4142_v45 }
 0x1ea   : > { %1419 = vadd.xlane.f32.xlu0 %v1253_v2  ;;  %v1296_v2 = vmul.f32 %v4031_v62, %v1162_v51  ;;  %v1133_v4 = vmax.f32 %v1005_v59, 0.0  ;;  %v1037_v51 = vadd.f32 %v4173_v19, %v4142_v45 }
 0x1ec   : > { %1483 = vadd.xlane.f32.xlu1 %v1285_v61  ;;  %v1295_v61 = vmul.f32 %v4031_v62, %v1161_v60  ;;  %v1267_v49 = vmul.f32 %v4031_v62, %v1133_v4  ;;  %v1053_v60 = vadd.f32 %v4203_v39, %v4142_v45 }
 0x1ee   : > { %1441 = vadd.xlane.f32.xlu0 %v1264_v13  ;;  %v4226_v13 = vadd.f32 %v4039_v5, %v4062_v22  ;;  %v1181_v41 = vmax.f32 %v1053_v60, 0.0 }
 0x1f0   : > { %1439 = vadd.xlane.f32.xlu1 %v1263_v20  ;;  %v1311_v20 = vmul.f32 %v4031_v62, %v1177_v8  ;;  %v4265_v8 = vadd.f32 %v4039_v5, %v4077_v35  ;;  %v1315_v15 = vmul.f32 %v4031_v62, %v1181_v41 }
 0x1f2   : > { %1383 = vadd.xlane.f32.xlu0 %v1235_v26  ;;  %v1178_v26 = vmax.f32 %v1050_v17, 0.0 }
 0x1f4   : > { %1351 = vadd.xlane.f32.xlu1 %v1219_v36  ;;  %v1179_v36 = vmax.f32 %v1051_v23, 0.0  ;;  %v1312_v31 = vmul.f32 %v4031_v62, %v1178_v26  ;;  %v1008_v23 = vadd.f32 %v4132_v37, %v4042_v6 }
 0x1f6   : > { %1443 = vadd.xlane.f32.xlu0 %v1265_v40  ;;  %v1164_v40 = vmax.f32 %v1036_v27, 0.0  ;;  %v1313_v44 = vmul.f32 %v4031_v62, %v1179_v36  ;;  %v992_v27 = vadd.f32 %v4053_v14, %v4042_v6  ;;  %v1136_v36 = vmax.f32 %v1008_v23, 0.0 }
 0x1f8   : > { %1415 = vadd.xlane.f32.xlu1 %v1251_v47  ;;  %v1135_v47 = vmax.f32 %v1007_v52, 0.0  ;;  %v1298_v59 = vmul.f32 %v4031_v62, %v1164_v40  ;;  %v1040_v52 = vadd.f32 %v4173_v19, %v4042_v6  ;;  %v1120_v40 = vmax.f32 %v992_v27, 0.0 }
 0x1fa   : > { %1445 = vadd.xlane.f32.xlu0 %v1266_v43  ;;  %v1180_v43 = vmax.f32 %v1052_v32, 0.0  ;;  %v1269_v63 = vmul.f32 %v4031_v62, %v1135_v47  ;;  %v1024_v32 = vadd.f32 %v4087_v42, %v4042_v6  ;;  %v1270_v47 = vmul.f32 %v4031_v62, %v1136_v36 }
 0x1fb   : > { %v1254_v60 = vmul.f32 %v4031_v62, %v1120_v40  ;;  %v1195_v36 = vmax.f32 %v4162_v12, 0.0  ;;  %v1054_v12 = vadd.f32 %v4203_v39, %v4047_v10 }
 0x1fc   : > { %1505 = vadd.xlane.f32.xlu1 %v1296_v2  ;;  %v1165_v2 = vmax.f32 %v1037_v51, 0.0  ;;  %v1314_v4 = vmul.f32 %v4031_v62, %v1180_v43  ;;  %v1168_v51 = vmax.f32 %v1040_v52, 0.0  ;;  %v1056_v43 = vadd.f32 %v4203_v39, %v4042_v6 }
 0x1fd   : > { %v1038_v52 = vadd.f32 %v4173_v19, %v4047_v10  ;;  %v1329_v40 = vmul.f32 %v4031_v62, %v1195_v36 }
 0x1fe   : > { %1503 = vadd.xlane.f32.xlu0 %v1295_v61  ;;  %v1055_v61 = vadd.f32 %v4203_v39, %v4115_v16  ;;  %v1299_v45 = vmul.f32 %v4031_v62, %v1165_v2  ;;  %v1301_v16 = vmul.f32 %v4031_v62, %v1167_v9  ;;  %v1302_v2 = vmul.f32 %v4031_v62, %v1168_v51 }
 0x1ff   : > { %v1184_v41 = vmax.f32 %v1056_v43, 0.0  ;;  %v1196_v43 = vmax.f32 %v4180_v25, 0.0 }
 0x200   : > { %1447 = vadd.xlane.f32.xlu1 %v1267_v49  ;;  %v960_v49 = vadd.f32 %v4006_v53, %v4042_v6  ;;  %v1183_v17 = vmax.f32 %v1055_v61, 0.0 }
 0x202   : > { %1535 = vadd.xlane.f32.xlu0 %v1311_v20  ;;  %v976_v20 = vadd.f32 %v4013_v55, %v4042_v6  ;;  %v1088_v21 = vmax.f32 %v960_v49, 0.0  ;;  %v4303_v6 = vadd.f32 %v4039_v5, %v4105_v7 }
 0x204   : > { %1507 = vadd.xlane.f32.xlu1 %v1297_v57  ;;  %v1317_v57 = vmul.f32 %v4031_v62, %v1183_v17  ;;  %v1104_v26 = vmax.f32 %v976_v20, 0.0  ;;  %v1006_v20 = vadd.f32 %v4132_v37, %v4047_v10 }
 0x206   : > { %1479 = vadd.xlane.f32.xlu0 %v1283_v50  ;;  %v1222_v50 = vmul.f32 %v4031_v62, %v1088_v21  ;;  %v4315_v21 = vadd.f32 %v4039_v5, %v4102_v3  ;;  %v1134_v27 = vmax.f32 %v1006_v20, 0.0 }
 0x208   : > { %1537 = vadd.xlane.f32.xlu1 %v1312_v31  ;;  %v1238_v31 = vmul.f32 %v4031_v62, %v1104_v26 }
 0x20a   : > { %1539 = vadd.xlane.f32.xlu0 %v1313_v44  ;;  %v4287_v44 = vadd.f32 %v4039_v5, %v4096_v58 }
 0x20c   : > { %1509 = vadd.xlane.f32.xlu1 %v1298_v59  ;;  %v974_v59 = vadd.f32 %v4013_v55, %v4047_v10 }
 0x20e   : > { %1451 = vadd.xlane.f32.xlu0 %v1269_v63  ;;  %v1152_v63 = vmax.f32 %v1024_v32, 0.0  ;;  %v1102_v1 = vmax.f32 %v974_v59, 0.0  ;;  %v1166_v32 = vmax.f32 %v1038_v52, 0.0 }
 0x210   : > { %1541 = vadd.xlane.f32.xlu1 %v1314_v4  ;;  %v990_v4 = vadd.f32 %v4053_v14, %v4047_v10  ;;  %v1286_v61 = vmul.f32 %v4031_v62, %v1152_v63  ;;  %v1236_v9 = vmul.f32 %v4031_v62, %v1102_v1  ;;  %v1300_v59 = vmul.f32 %v4031_v62, %v1166_v32 }
 0x211   : > { %v963_v63 = vadd.f32 %v4006_v53, %v4062_v22  ;;  %v1197_v1 = vmax.f32 %v4189_v29, 0.0 }
 0x212   : > { %1511 = vadd.xlane.f32.xlu0 %v1299_v45  ;;  %v958_v45 = vadd.f32 %v4006_v53, %v4047_v10  ;;  %v1118_v49 = vmax.f32 %v990_v4, 0.0 }
 0x213   : > { %v1091_v4 = vmax.f32 %v963_v63, 0.0  ;;  %v1331_v25 = vmul.f32 %v4031_v62, %v1197_v1  ;;  %v1057_v63 = vadd.f32 %v4203_v39, %v4065_v24 }
 0x214   : > { %1543 = vadd.xlane.f32.xlu1 %v1315_v15  ;;  %v1318_v15 = vmul.f32 %v4031_v62, %v1184_v41  ;;  %v1086_v17 = vmax.f32 %v958_v45, 0.0  ;;  %v1252_v23 = vmul.f32 %v4031_v62, %v1118_v49  ;;  %v995_v41 = vadd.f32 %v4053_v14, %v4062_v22 }
 0x215   : > { %v1225_v45 = vmul.f32 %v4031_v62, %v1091_v4  ;;  %v1027_v49 = vadd.f32 %v4087_v42, %v4062_v22 }
 0x216   : > { %1515 = vadd.xlane.f32.xlu0 %v1301_v16  ;;  %v4311_v16 = vadd.f32 %v4039_v5, %v4093_v48  ;;  %v1220_v26 = vmul.f32 %v4031_v62, %v1086_v17  ;;  %v1268_v5 = vmul.f32 %v4031_v62, %v1134_v27 }
 0x217   : > { %v1155_v20 = vmax.f32 %v1027_v49, 0.0  ;;  %v964_v49 = vadd.f32 %v4006_v53, %v4074_v33 }
 0x218   : > { %1547 = vadd.xlane.f32.xlu1 %v1317_v57  ;;  %v1194_v57 = vmax.f32 %v4158_v11, 0.0  ;;  %v1022_v11 = vadd.f32 %v4087_v42, %v4047_v10 }
 0x219   : > { %v1289_v27 = vmul.f32 %v4031_v62, %v1155_v20 }
 0x21a   : > { %1357 = vadd.xlane.f32.xlu0 %v1222_v50  ;;  %v1328_v50 = vmul.f32 %v4031_v62, %v1194_v57  ;;  %v1150_v51 = vmax.f32 %v1022_v11, 0.0  ;;  %v1200_v57 = vmax.f32 %v4210_v46, 0.0  ;;  %v993_v11 = vadd.f32 %v4053_v14, %v4065_v24 }
 0x21c   : > { %1389 = vadd.xlane.f32.xlu1 %v1238_v31  ;;  %v1193_v31 = vmax.f32 %v4169_v18, 0.0  ;;  %v1284_v18 = vmul.f32 %v4031_v62, %v1150_v51  ;;  %v1334_v36 = vmul.f32 %v4031_v62, %v1200_v57 }
 0x21e   : > { %1453 = vadd.xlane.f32.xlu0 %v1270_v47  ;;  %v1327_v47 = vmul.f32 %v4031_v62, %v1193_v31 }
 0x220   : > { %1421 = vadd.xlane.f32.xlu1 %v1254_v60  ;;  %v1182_v60 = vmax.f32 %v1054_v12, 0.0  ;;  %v1121_v12 = vmax.f32 %v993_v11, 0.0 }
 0x222   : > { %1517 = vadd.xlane.f32.xlu0 %v1302_v2  ;;  %v1330_v2 = vmul.f32 %v4031_v62, %v1196_v43  ;;  %v1316_v10 = vmul.f32 %v4031_v62, %v1182_v60 }
 0x224   : > { %1485 = vadd.xlane.f32.xlu1 %v1286_v61  ;;  %v1198_v61 = vmax.f32 %v4193_v34, 0.0 }
 0x226   : > { %1385 = vadd.xlane.f32.xlu0 %v1236_v9  ;;  %v1123_v9 = vmax.f32 %v995_v41, 0.0  ;;  %v1332_v29 = vmul.f32 %v4031_v62, %v1198_v61  ;;  %v977_v41 = vadd.f32 %v4013_v55, %v4065_v24 }
 0x228   : > { %1549 = vadd.xlane.f32.xlu1 %v1318_v15  ;;  %v1199_v15 = vmax.f32 %v4200_v38, 0.0  ;;  %v1257_v17 = vmul.f32 %v4031_v62, %v1123_v9  ;;  %v961_v38 = vadd.f32 %v4006_v53, %v4065_v24  ;;  %v1185_v9 = vmax.f32 %v1057_v63, 0.0 }
 0x22a   : > { %1417 = vadd.xlane.f32.xlu0 %v1252_v23  ;;  %v1059_v23 = vadd.f32 %v4203_v39, %v4062_v22  ;;  %v1333_v34 = vmul.f32 %v4031_v62, %v1199_v15  ;;  %v1089_v31 = vmax.f32 %v961_v38, 0.0 }
 0x22c   : > { %1353 = vadd.xlane.f32.xlu1 %v1220_v26  ;;  %v979_v26 = vadd.f32 %v4013_v55, %v4062_v22  ;;  %v1223_v51 = vmul.f32 %v4031_v62, %v1089_v31 }
 0x22e   : > { %1569 = vadd.xlane.f32.xlu0 %v1328_v50  ;;  %v1187_v50 = vmax.f32 %v1059_v23, 0.0  ;;  %v1107_v52 = vmax.f32 %v979_v26, 0.0  ;;  %v1105_v23 = vmax.f32 %v977_v41, 0.0 }
 0x230   : > { %1449 = vadd.xlane.f32.xlu1 %v1268_v5  ;;  %v1011_v5 = vadd.f32 %v4132_v37, %v4062_v22  ;;  %v1321_v46 = vmul.f32 %v4031_v62, %v1187_v50 }
 0x232   : > { %1571 = vadd.xlane.f32.xlu0 %v1329_v40  ;;  %v1241_v40 = vmul.f32 %v4031_v62, %v1107_v52  ;;  %v1139_v32 = vmax.f32 %v1011_v5, 0.0  ;;  %v1092_v5 = vmax.f32 %v964_v49, 0.0 }
 0x234   : > { %1567 = vadd.xlane.f32.xlu1 %v1327_v47  ;;  %v1043_v47 = vadd.f32 %v4173_v19, %v4062_v22  ;;  %v1273_v43 = vmul.f32 %v4031_v62, %v1139_v32  ;;  %v1255_v22 = vmul.f32 %v4031_v62, %v1121_v12  ;;  %v1041_v12 = vadd.f32 %v4173_v19, %v4065_v24 }
 0x236   : > { %1513 = vadd.xlane.f32.xlu0 %v1300_v59  ;;  %v1025_v59 = vadd.f32 %v4087_v42, %v4065_v24  ;;  %v1171_v60 = vmax.f32 %v1043_v47, 0.0  ;;  %v1239_v47 = vmul.f32 %v4031_v62, %v1105_v23 }
 0x238   : > { %1481 = vadd.xlane.f32.xlu1 %v1284_v18  ;;  %v4373_v18 = vand.u32 127, %v634_v28  ;;  %v1153_v1 = vmax.f32 %v1025_v59, 0.0  ;;  %v1305_v28 = vmul.f32 %v4031_v62, %v1171_v60 }
 0x23a   : > { %1573 = vadd.xlane.f32.xlu0 %v1330_v2  ;;  %v1862_v2 = vadd.s32 4294967288, %v4373_v18  ;;  %v1287_v20 = vmul.f32 %v4031_v62, %v1153_v1  ;;  %v1876_v52 = vadd.s32 4294967272, %v4373_v18  ;;  %v1226_v1 = vmul.f32 %v4031_v62, %v1092_v5 }
 0x23b   : > { %v980_v5 = vadd.f32 %v4013_v55, %v4074_v33 }
 0x23c   : > { %1545 = vadd.xlane.f32.xlu1 %v1316_v10  ;;  %v4379_v10 = vstv %s680_s11 }
 0x23e   : > { %1575 = vadd.xlane.f32.xlu0 %v1331_v25  ;;  %v1203_v25 = vmax.f32 %v4226_v13, 0.0 }
 0x240   : > { %1363 = vadd.xlane.f32.xlu1 %v1225_v45  ;;  %v1869_v45 = vadd.s32 4294967280, %v4373_v18 }
 0x242   : > { %1577 = vadd.xlane.f32.xlu0 %v1332_v29  ;;  %v4390_v29 = vsub.s32 %v4373_v18, %v3977_v30  ;;  %v4403_v38 = vsub.s32 %v1869_v45, %v3977_v30  ;;  %v1169_v45 = vmax.f32 %v1041_v12, 0.0 }
 0x244   : > { %1427 = vadd.xlane.f32.xlu1 %v1257_v17  ;;  %v4394_v17 = vsub.s32 %v1862_v2, %v3977_v30  ;;  %v4420_v2 = vsub.s32 %v1876_v52, %v3977_v30  ;;  %v1201_v52 = vmax.f32 %v4239_v54, 0.0 }
 0x246   : > { %1579 = vadd.xlane.f32.xlu0 %v1333_v34  ;;  %v1009_v34 = vadd.f32 %v4132_v37, %v4065_v24 }
 0x248   : > { %1491 = vadd.xlane.f32.xlu1 %v1289_v27  ;;  %v1337_v27 = vmul.f32 %v4031_v62, %v1203_v25 }
 0x24a   : > { %1581 = vadd.xlane.f32.xlu0 %v1334_v36  ;;  %v1319_v36 = vmul.f32 %v4031_v62, %v1185_v9 }
 0x24c   : > { %1555 = vadd.xlane.f32.xlu1 %v1321_v46 }
 0x24e   : > { %1395 = vadd.xlane.f32.xlu0 %v1241_v40  ;;  %v996_v40 = vadd.f32 %v4053_v14, %v4074_v33 }
 0x250   : > { %1359 = vadd.xlane.f32.xlu1 %v1223_v51  ;;  %v1137_v51 = vmax.f32 %v1009_v34, 0.0  ;;  %v1124_v25 = vmax.f32 %v996_v40, 0.0  ;;  %v1060_v34 = vadd.f32 %v4203_v39, %v4074_v33 }
 0x252   : > { %1459 = vadd.xlane.f32.xlu0 %v1273_v43 }
 0x253   : > { %v1344_v4 = vpop.xlane.xlu0 %1343 }
 0x254   : > { %1423 = vadd.xlane.f32.xlu1 %v1255_v22  ;;  %v1600_v15 = vadd.f32 %v4379_v10, %v1344_v4  ;;  %v1028_v4 = vadd.f32 %v4087_v42, %v4074_v33 }
 0x255   : > { %v1376_v61 = vpop.xlane.xlu1 %1375 }
 0x256   : > { %1523 = vadd.xlane.f32.xlu0 %v1305_v28  ;;  %v1616_v57 = vadd.f32 %v4379_v10, %v1376_v61  ;;  %v1861_v46 = vrot.slane %v1600_v15, %v4390_v29  ;;  %v1156_v23 = vmax.f32 %v1028_v4, 0.0  ;;  %v1012_v4 = vadd.f32 %v4132_v37, %v4074_v33 }
 0x257   : > { %v1346_v13 = vpop.xlane.xlu0 %1345 }
 0x258   : > { %v1601_v26 = vadd.f32 %v4379_v10, %v1346_v13  ;;  %1487 = vadd.xlane.f32.xlu1 %v1287_v20  ;;  %v1970_v59 = vrot.slane %v1616_v57, %v4390_v29  ;;  %v1271_v20 = vmul.f32 %v4031_v62, %v1137_v51  ;;  %v1290_v54 = vmul.f32 %v4031_v62, %v1156_v23 }
 0x259   : > { %v1378_v50 = vpop.xlane.xlu1 %1377 }
 0x25a   : > { %v1866_v31 = vrot.slane %v1601_v26, %v4394_v17  ;;  %v1617_v11 = vadd.f32 %v4379_v10, %v1378_v50  ;;  %1587 = vadd.xlane.f32.xlu0 %v1337_v27  ;;  %v1258_v50 = vmul.f32 %v4031_v62, %v1124_v25 }
 0x25b   : > { %v1348_v32 = vpop.xlane.xlu0 %1347 }
 0x25c   : > { %v1868_v43 = vsel %vm1867_vm1, %v1866_v31, %v1861_v46  ;;  %v1974_v60 = vrot.slane %v1617_v11, %v4394_v17  ;;  %v1602_v63 = vadd.f32 %v4379_v10, %v1348_v32  ;;  %1551 = vadd.xlane.f32.xlu1 %v1319_v36  ;;  %v1303_v11 = vmul.f32 %v4031_v62, %v1169_v45 }
 0x25d   : > { %v1380_v22 = vpop.xlane.xlu1 %1379  ;;  %v1188_v32 = vmax.f32 %v1060_v34, 0.0  ;;  %v1140_v34 = vmax.f32 %v1012_v4, 0.0 }
 0x25e   : > { %v1975_v24 = vsel %vm1867_vm1, %v1974_v60, %v1970_v59  ;;  %v1873_v41 = vrot.slane %v1602_v63, %v4403_v38  ;;  %v1618_v28 = vadd.f32 %v4379_v10, %v1380_v22  ;;  %1391 = vadd.xlane.f32.xlu0 %v1239_v47  ;;  %v1108_v60 = vmax.f32 %v980_v5, 0.0 }
 0x25f   : > { %v1350_v61 = vpop.xlane.xlu0 %1349  ;;  %v978_v5 = vadd.f32 %v4013_v55, %v4077_v35 }
 0x260   : > { %v1875_v9 = vsel %vm1874_vm2, %v1873_v41, %v1868_v43  ;;  %v1979_v49 = vrot.slane %v1618_v28, %v4403_v38  ;;  %v1603_v15 = vadd.f32 %v4379_v10, %v1350_v61  ;;  %1365 = vadd.xlane.f32.xlu1 %v1226_v1  ;;  %v1335_v43 = vmul.f32 %v4031_v62, %v1201_v52 }
 0x261   : > { %v1410_v13 = vpop.xlane.xlu1 %1409  ;;  %v1322_v41 = vmul.f32 %v4031_v62, %v1188_v32  ;;  %v1204_v28 = vmax.f32 %v4246_v56, 0.0  ;;  %v1106_v4 = vmax.f32 %v978_v5, 0.0 }
 0x262   : > { %v1980_v57 = vsel %vm1874_vm2, %v1979_v49, %v1975_v24  ;;  %v1880_v26 = vrot.slane %v1603_v15, %v4420_v2  ;;  %v1633_v27 = vadd.f32 %v4379_v10, %v1410_v13  ;;  %1455 = vadd.xlane.f32.xlu0 %v1271_v20  ;;  %v1242_v15 = vmul.f32 %v4031_v62, %v1108_v60 }
 0x263   : > { %v1408_v36 = vpop.xlane.xlu0 %1407  ;;  %v1044_v20 = vadd.f32 %v4173_v19, %v4074_v33  ;;  %v1338_v33 = vmul.f32 %v4031_v62, %v1204_v28  ;;  %v1026_v60 = vadd.f32 %v4087_v42, %v4077_v35 }
 0x264   : > { %v4442_v46 = vsel %vm1881_vm3, %v1880_v26, %v1875_v9  ;;  %v1632_v31 = vadd.f32 %v4379_v10, %v1408_v36  ;;  %1429 = vadd.xlane.f32.xlu1 %v1258_v50  ;;  %v2053_v47 = vrot.slane %v1633_v27, %v4394_v17  ;;  %v962_v9 = vadd.f32 %v4006_v53, %v4077_v35 }
 0x265   : > { %v1382_v40 = vpop.xlane.xlu1 %1381  ;;  %v994_v26 = vadd.f32 %v4053_v14, %v4077_v35  ;;  %v1172_v32 = vmax.f32 %v1044_v20, 0.0 }
 0x266   : > { %v2049_v51 = vrot.slane %v1632_v31, %v4390_v29  ;;  %v1619_v12 = vadd.f32 %v4379_v10, %v1382_v40  ;;  %1519 = vadd.xlane.f32.xlu0 %v1303_v11  ;;  %v1090_v36 = vmax.f32 %v962_v9, 0.0  ;;  %v1274_v40 = vmul.f32 %v4031_v62, %v1140_v34 }
 0x267   : > { %v1412_v59 = vpop.xlane.xlu0 %1411  ;;  %v1154_v9 = vmax.f32 %v1026_v60, 0.0 }
 0x268   : > { %v2054_v63 = vsel %vm1867_vm1, %v2053_v47, %v2049_v51  ;;  %v1984_v22 = vrot.slane %v1619_v12, %v4420_v2  ;;  %v1634_v1 = vadd.f32 %v4379_v10, %v1412_v59  ;;  %1493 = vadd.xlane.f32.xlu1 %v1290_v54  ;;  %v1122_v12 = vmax.f32 %v994_v26, 0.0 }
 0x269   : > { %v1414_v24 = vpop.xlane.xlu1 %1413  ;;  %v1883_v26 = vadd.s32 4294967264, %v4373_v18 }
 0x26a   : > { %v4459_v25 = vsel %vm1881_vm3, %v1984_v22, %v1980_v57  ;;  %v2058_v61 = vrot.slane %v1634_v1, %v4403_v38  ;;  %v1635_v45 = vadd.f32 %v4379_v10, %v1414_v24  ;;  %1583 = vadd.xlane.f32.xlu0 %v1335_v43  ;;  %v1224_v43 = vmul.f32 %v4031_v62, %v1090_v36 }
 0x26b   : > { %v1474_v49 = vpop.xlane.xlu0 %1473  ;;  %v1306_v1 = vmul.f32 %v4031_v62, %v1172_v32  ;;  %v1010_v24 = vadd.f32 %v4132_v37, %v4077_v35  ;;  %v4522_v32 = vsub.s32 %v1883_v26, %v3977_v30 }
 0x26c   : > { %v2059_v13 = vsel %vm1874_vm2, %v2058_v61, %v2054_v63  ;;  %v2063_v56 = vrot.slane %v1635_v45, %v4420_v2  ;;  %v1665_v23 = vadd.f32 %v4379_v10, %v1474_v49  ;;  %1557 = vadd.xlane.f32.xlu1 %v1322_v41  ;;  %v1256_v45 = vmul.f32 %v4031_v62, %v1122_v12 }
 0x26d   : > { %v1472_v57 = vpop.xlane.xlu1 %1471  ;;  %v1058_v49 = vadd.f32 %v4203_v39, %v4077_v35 }
 0x26e   : > { %v4474_v27 = vsel %vm1881_vm3, %v2063_v56, %v2059_v13  ;;  %v1664_v50 = vadd.f32 %v4379_v10, %v1472_v57  ;;  %1397 = vadd.xlane.f32.xlu0 %v1242_v15  ;;  %v2211_v31 = vrot.slane %v1665_v23, %v4394_v17  ;;  %v1240_v13 = vmul.f32 %v4031_v62, %v1106_v4 }
 0x26f   : > { %v1478_v52 = vpop.xlane.xlu0 %1477  ;;  %v1138_v56 = vmax.f32 %v1010_v24, 0.0  ;;  %v1042_v23 = vadd.f32 %v4173_v19, %v4077_v35  ;;  %v1288_v57 = vmul.f32 %v4031_v62, %v1154_v9  ;;  %v999_v35 = vadd.f32 %v4053_v14, %v4093_v48  ;;  %v4540_v9 = vld [vmem:[%s5293_s6] ss:$0 sm:$0xff] }
 0x270   : > { %v2207_v11 = vrot.slane %v1664_v50, %v4390_v29  ;;  %1589 = vadd.xlane.f32.xlu1 %v1338_v33  ;;  %v1667_v47 = vadd.f32 %v4379_v10, %v1478_v52  ;;  %v1186_v50 = vmax.f32 %v1058_v49, 0.0  ;;  %v967_v33 = vadd.f32 %v4006_v53, %v4093_v48 }
 0x271   : > { %v1476_v51 = vpop.xlane.xlu1 %1475  ;;  %v1272_v5 = vmul.f32 %v4031_v62, %v1138_v56  ;;  %v1127_v24 = vmax.f32 %v999_v35, 0.0  ;;  %v1015_v56 = vadd.f32 %v4132_v37, %v4093_v48 }
 0x272   : > { %v2212_v54 = vsel %vm1867_vm1, %v2211_v31, %v2207_v11  ;;  %v1666_v59 = vadd.f32 %v4379_v10, %v1476_v51  ;;  %1461 = vadd.xlane.f32.xlu0 %v1274_v40  ;;  %v2221_v41 = vrot.slane %v1667_v47, %v4420_v2  ;;  %v1170_v31 = vmax.f32 %v1042_v23, 0.0 }
 0x273   : > { %v4489_v63 = vpop.xlane.xlu0 %1355  ;;  %v1320_v47 = vmul.f32 %v4031_v62, %v1186_v50  ;;  %v1095_v51 = vmax.f32 %v967_v33, 0.0 }
 0x274   : > { %v2216_v22 = vrot.slane %v1666_v59, %v4403_v38  ;;  %1361 = vadd.xlane.f32.xlu1 %v1224_v43  ;;  %v983_v59 = vadd.f32 %v4013_v55, %v4093_v48 }
 0x275   : > { %v4496_v28 = vpop.xlane.xlu1 %1387 }
 0x276   : > { %v2217_v61 = vsel %vm1874_vm2, %v2216_v22, %v2212_v54  ;;  %1525 = vadd.xlane.f32.xlu0 %v1306_v1  ;;  %v1202_v54 = vmax.f32 %v4265_v8, 0.0  ;;  %v1304_v1 = vmul.f32 %v4031_v62, %v1170_v31  ;;  %v1229_v62 = vmul.f32 %v4540_v9, %v1095_v51 }
 0x277   : > { %v4502_v15 = vpop.xlane.xlu0 %1419  ;;  %v4505_v20 = vsel %vm1881_vm3, %v2221_v41, %v2217_v61  ;;  %v1047_v41 = vadd.f32 %v4173_v19, %v4093_v48 }
 0x278   : > { %1425 = vadd.xlane.f32.xlu1 %v1256_v45  ;;  %v1336_v50 = vmul.f32 %v4540_v9, %v1202_v54 }
 0x279   : > { %v4510_v34 = vpop.xlane.xlu1 %1483 }
 0x27a   : > { %1393 = vadd.xlane.f32.xlu0 %v1240_v13  ;;  %v1111_v13 = vmax.f32 %v983_v59, 0.0 }
 0x27b   : > { %v1442_v36 = vpop.xlane.xlu0 %1441 }
 0x27c   : > { %v1649_v52 = vadd.f32 %v4379_v10, %v1442_v36  ;;  %1489 = vadd.xlane.f32.xlu1 %v1288_v57  ;;  %v1261_v36 = vmul.f32 %v4540_v9, %v1127_v24 }
 0x27d   : > { %v1440_v11 = vpop.xlane.xlu1 %1439 }
 0x27e   : > { %v1648_v40 = vadd.f32 %v4379_v10, %v1440_v11  ;;  %1457 = vadd.xlane.f32.xlu0 %v1272_v5  ;;  %v2132_v43 = vrot.slane %v1649_v52, %v4394_v17  ;;  %v1175_v52 = vmax.f32 %v1047_v41, 0.0  ;;  %v1063_v11 = vadd.f32 %v4203_v39, %v4093_v48 }
 0x27f   : > { %v1384_v12 = vpop.xlane.xlu0 %1383 }
 0x280   : > { %v2128_v60 = vrot.slane %v1648_v40, %v4390_v29  ;;  %v1620_v22 = vadd.f32 %v4379_v10, %v1384_v12  ;;  %1553 = vadd.xlane.f32.xlu1 %v1320_v47  ;;  %v1245_v40 = vmul.f32 %v4540_v9, %v1111_v13  ;;  %v1143_v47 = vmax.f32 %v1015_v56, 0.0 }
 0x281   : > { %v1352_v4 = vpop.xlane.xlu1 %1351  ;;  %v1191_v24 = vmax.f32 %v1063_v11, 0.0  ;;  %v997_v13 = vadd.f32 %v4053_v14, %v4096_v58 }
 0x282   : > { %v2133_v8 = vsel %vm1867_vm1, %v2132_v43, %v2128_v60  ;;  %v1989_v61 = vrot.slane %v1620_v22, %v4522_v32  ;;  %v1604_v45 = vadd.f32 %v4379_v10, %v1352_v4  ;;  %1521 = vadd.xlane.f32.xlu0 %v1304_v1  ;;  %v1309_v43 = vmul.f32 %v4540_v9, %v1175_v52 }
 0x283   : > { %v1444_v49 = vpop.xlane.xlu0 %1443  ;;  %v965_v60 = vadd.f32 %v4006_v53, %v4096_v58 }
 0x284   : > { %v4547_v23 = vsel %vm1888_vm4, %v1989_v61, %v4459_v25  ;;  %v1887_v57 = vrot.slane %v1604_v45, %v4522_v32  ;;  %v1650_v26 = vadd.f32 %v4379_v10, %v1444_v49  ;;  %1371 = vadd.xlane.f32.xlu1 %v1229_v62  ;;  %v981_v62 = vadd.f32 %v4013_v55, %v4096_v58 }
 0x285   : > { %v1416_v33 = vpop.xlane.xlu1 %1415  ;;  %v1093_v49 = vmax.f32 %v965_v60, 0.0 }
 0x286   : > { %v4555_v5 = vsel %vm1888_vm4, %v1887_v57, %v4442_v46  ;;  %v2137_v31 = vrot.slane %v1650_v26, %v4403_v38  ;;  %v1636_v25 = vadd.f32 %v4379_v10, %v1416_v33  ;;  %1585 = vadd.xlane.f32.xlu0 %v1336_v50  ;;  %v1031_v46 = vadd.f32 %v4087_v42, %v4093_v48 }
 0x287   : > { %v1446_v35 = vpop.xlane.xlu0 %1445  ;;  %v1325_v50 = vmul.f32 %v4540_v9, %v1191_v24  ;;  %v1109_v11 = vmax.f32 %v981_v62, 0.0 }
 0x288   : > { %v2138_v51 = vsel %vm1874_vm2, %v2137_v31, %v2133_v8  ;;  %v2068_v12 = vrot.slane %v1636_v25, %v4522_v32  ;;  %v1651_v54 = vadd.f32 %v4379_v10, %v1446_v35  ;;  %1435 = vadd.xlane.f32.xlu1 %v1261_v36  ;;  %v1277_v8 = vmul.f32 %v4540_v9, %v1143_v47 }
 0x289   : > { %v1506_v59 = vpop.xlane.xlu1 %1505  ;;  %v1159_v45 = vmax.f32 %v1031_v46, 0.0  ;;  %v1013_v36 = vadd.f32 %v4132_v37, %v4096_v58 }
 0x28a   : > { %v4572_v22 = vsel %vm1888_vm4, %v2068_v12, %v4474_v27  ;;  %v2142_v1 = vrot.slane %v1651_v54, %v4420_v2  ;;  %v1681_v4 = vadd.f32 %v4379_v10, %v1506_v59  ;;  %1403 = vadd.xlane.f32.xlu0 %v1245_v40  ;;  %v1029_v40 = vadd.f32 %v4087_v42, %v4096_v58 }
 0x28b   : > { %v1504_v41 = vpop.xlane.xlu0 %1503  ;;  %v1293_v25 = vmul.f32 %v4540_v9, %v1159_v45  ;;  %v1125_v12 = vmax.f32 %v997_v13, 0.0  ;;  %v1141_v46 = vmax.f32 %v1013_v36, 0.0  ;;  %v1045_v59 = vadd.f32 %v4173_v19, %v4096_v58 }
 0x28c   : > { %v2143_v48 = vsel %vm1881_vm3, %v2142_v1, %v2138_v51  ;;  %v1680_v61 = vadd.f32 %v4379_v10, %v1504_v41  ;;  %1531 = vadd.xlane.f32.xlu1 %v1309_v43  ;;  %v2290_v56 = vrot.slane %v1681_v4, %v4394_v17  ;;  %v1227_v51 = vmul.f32 %v4540_v9, %v1093_v49 }
 0x28d   : > { %v1448_v27 = vpop.xlane.xlu1 %1447  ;;  %v1243_v1 = vmul.f32 %v4540_v9, %v1109_v11  ;;  %v1157_v41 = vmax.f32 %v1029_v40, 0.0  ;;  %v1275_v62 = vmul.f32 %v4540_v9, %v1141_v46  ;;  %v1061_v49 = vadd.f32 %v4203_v39, %v4096_v58 }
 0x28e   : > { %v2286_v57 = vrot.slane %v1680_v61, %v4390_v29  ;;  %v1652_v26 = vadd.f32 %v4379_v10, %v1448_v27  ;;  %1467 = vadd.xlane.f32.xlu0 %v1277_v8  ;;  %v1259_v61 = vmul.f32 %v4540_v9, %v1125_v12  ;;  %v1173_v27 = vmax.f32 %v1045_v59, 0.0 }
 0x28f   : > { %v1536_v33 = vpop.xlane.xlu0 %1535  ;;  %v1291_v36 = vmul.f32 %v4540_v9, %v1157_v41  ;;  %v1205_v11 = vmax.f32 %v4287_v44, 0.0  ;;  %v984_v46 = vadd.f32 %v4013_v55, %v4102_v3 }
 0x290   : > { %v2291_v52 = vsel %vm1867_vm1, %v2290_v56, %v2286_v57  ;;  %v2147_v31 = vrot.slane %v1652_v26, %v4522_v32  ;;  %1563 = vadd.xlane.f32.xlu1 %v1325_v50  ;;  %v1696_v43 = vadd.f32 %v4379_v10, %v1536_v33  ;;  %v1307_v40 = vmul.f32 %v4540_v9, %v1173_v27 }
 0x291   : > { %v1508_v35 = vpop.xlane.xlu1 %1507 }
 0x292   : > { %v4595_v47 = vsel %vm1888_vm4, %v2147_v31, %v2143_v48  ;;  %1499 = vadd.xlane.f32.xlu0 %v1293_v25  ;;  %v1682_v4 = vadd.f32 %v4379_v10, %v1508_v35  ;;  %v2365_v13 = vrot.slane %v1696_v43, %v4390_v29  ;;  %v968_v31 = vadd.f32 %v4006_v53, %v4102_v3 }
 0x293   : > { %v1480_v54 = vpop.xlane.xlu0 %1479 }
 0x294   : > { %v1668_v60 = vadd.f32 %v4379_v10, %v1480_v54  ;;  %1367 = vadd.xlane.f32.xlu1 %v1227_v51  ;;  %v2295_v50 = vrot.slane %v1682_v4, %v4403_v38  ;;  %v1189_v54 = vmax.f32 %v1061_v49, 0.0  ;;  %v1339_v4 = vmul.f32 %v4540_v9, %v1205_v11 }
 0x295   : > { %v1538_v24 = vpop.xlane.xlu1 %1537  ;;  %v1016_v49 = vadd.f32 %v4132_v37, %v4102_v3 }
 0x296   : > { %v2226_v8 = vrot.slane %v1668_v60, %v4522_v32  ;;  %v1697_v48 = vadd.f32 %v4379_v10, %v1538_v24  ;;  %1399 = vadd.xlane.f32.xlu0 %v1243_v1  ;;  %v2296_v59 = vsel %vm1874_vm2, %v2295_v50, %v2291_v52  ;;  %v1000_v60 = vadd.f32 %v4053_v14, %v4102_v3 }
 0x297   : > { %v1540_v45 = vpop.xlane.xlu0 %1539  ;;  %v1096_v24 = vmax.f32 %v968_v31, 0.0 }
 0x298   : > { %v4613_v56 = vsel %vm1888_vm4, %v2226_v8, %v4505_v20  ;;  %v2369_v57 = vrot.slane %v1697_v48, %v4394_v17  ;;  %v1698_v26 = vadd.f32 %v4379_v10, %v1540_v45  ;;  %1431 = vadd.xlane.f32.xlu1 %v1259_v61  ;;  %v1032_v8 = vadd.f32 %v4087_v42, %v4102_v3 }
 0x299   : > { %v1510_v33 = vpop.xlane.xlu1 %1509  ;;  %v1323_v61 = vmul.f32 %v4540_v9, %v1189_v54  ;;  %v1112_v45 = vmax.f32 %v984_v46, 0.0  ;;  %v1128_v27 = vmax.f32 %v1000_v60, 0.0  ;;  %v1230_v50 = vmul.f32 %v4540_v9, %v1096_v24 }
 0x29a   : > { %v2370_v58 = vsel %vm1867_vm1, %v2369_v57, %v2365_v13  ;;  %v2374_v25 = vrot.slane %v1698_v26, %v4403_v38  ;;  %v1683_v20 = vadd.f32 %v4379_v10, %v1510_v33  ;;  %1463 = vadd.xlane.f32.xlu0 %v1275_v62  ;;  %v1064_v54 = vadd.f32 %v4203_v39, %v4102_v3 }
 0x29b   : > { %v4625_v35 = vpop.xlane.xlu0 %1451  ;;  %v982_v60 = vadd.f32 %v4013_v55, %v4105_v7  ;;  %v966_v24 = vadd.f32 %v4006_v53, %v4105_v7  ;;  %v998_v55 = vadd.f32 %v4053_v14, %v4105_v7  ;;  %v1890_v53 = vadd.s32 4294967256, %v4373_v18 }
 0x29c   : > { %v2375_v51 = vsel %vm1874_vm2, %v2374_v25, %v2370_v58  ;;  %v2300_v12 = vrot.slane %v1683_v20, %v4420_v2  ;;  %1495 = vadd.xlane.f32.xlu1 %v1291_v36  ;;  %v1160_v36 = vmax.f32 %v1032_v8, 0.0  ;;  %v1246_v25 = vmul.f32 %v4540_v9, %v1112_v45 }
 0x29d   : > { %v1542_v43 = vpop.xlane.xlu1 %1541  ;;  %v1048_v20 = vadd.f32 %v4173_v19, %v4102_v3  ;;  %v1110_v8 = vmax.f32 %v982_v60, 0.0  ;;  %v1126_v14 = vmax.f32 %v998_v55, 0.0 }
 0x29e   : > { %v2301_v44 = vsel %vm1881_vm3, %v2300_v12, %v2296_v59  ;;  %v1699_v1 = vadd.f32 %v4379_v10, %v1542_v43  ;;  %1527 = vadd.xlane.f32.xlu0 %v1307_v40  ;;  %v1144_v12 = vmax.f32 %v1016_v49, 0.0  ;;  %v1294_v59 = vmul.f32 %v4540_v9, %v1160_v36 }
 0x29f   : > { %v1512_v41 = vpop.xlane.xlu0 %1511  ;;  %v1176_v43 = vmax.f32 %v1048_v20, 0.0  ;;  %v1897_v49 = vadd.s32 4294967248, %v4373_v18  ;;  %v4695_v36 = vsub.s32 %v1890_v53, %v3977_v30  ;;  %v1260_v60 = vmul.f32 %v4540_v9, %v1126_v14 }
 0x2a0   : > { %v2379_v48 = vrot.slane %v1699_v1, %v4420_v2  ;;  %v1684_v52 = vadd.f32 %v4379_v10, %v1512_v41  ;;  %1591 = vadd.xlane.f32.xlu1 %v1339_v4  ;;  %v1278_v1 = vmul.f32 %v4540_v9, %v1144_v12  ;;  %v1192_v4 = vmax.f32 %v1064_v54, 0.0 }
 0x2a1   : > { %v1544_v62 = vpop.xlane.xlu1 %1543  ;;  %v1310_v3 = vmul.f32 %v4540_v9, %v1176_v43  ;;  %v4703_v12 = vsub.s32 %v1897_v49, %v3977_v30 }
 0x2a2   : > { %v2380_v13 = vsel %vm1881_vm3, %v2379_v48, %v2375_v51  ;;  %v2305_v57 = vrot.slane %v1684_v52, %v4522_v32  ;;  %v1700_v26 = vadd.f32 %v4379_v10, %v1544_v62  ;;  %1559 = vadd.xlane.f32.xlu0 %v1323_v61  ;;  %v1262_v51 = vmul.f32 %v4540_v9, %v1128_v27 }
 0x2a3   : > { %v4649_v33 = vpop.xlane.xlu0 %1515  ;;  %v1014_v48 = vadd.f32 %v4132_v37, %v4105_v7  ;;  %v1062_v61 = vadd.f32 %v4203_v39, %v4105_v7  ;;  %v1326_v45 = vmul.f32 %v4540_v9, %v1192_v4  ;;  %v1094_v62 = vmax.f32 %v966_v24, 0.0 }
 0x2a4   : > { %v4652_v31 = vsel %vm1888_vm4, %v2305_v57, %v2301_v44  ;;  %v2384_v58 = vrot.slane %v1700_v26, %v4522_v32  ;;  %1373 = vadd.xlane.f32.xlu1 %v1230_v50  ;;  %v1244_v37 = vmul.f32 %v4540_v9, %v1110_v8  ;;  %v1030_v39 = vadd.f32 %v4087_v42, %v4105_v7 }
 0x2a5   : > { %v4658_v11 = vpop.xlane.xlu1 %1547  ;;  %v1190_v26 = vmax.f32 %v1062_v61, 0.0  ;;  %v1904_v50 = vadd.s32 4294967240, %v4373_v18  ;;  %v1638_v24 = vadd.f32 %v4379_v10, %v4502_v15 }
 0x2a6   : > { %v4661_v40 = vsel %vm1888_vm4, %v2384_v58, %v2380_v13  ;;  %1405 = vadd.xlane.f32.xlu0 %v1246_v25  ;;  %v1142_v13 = vmax.f32 %v1014_v48, 0.0  ;;  %v1228_v58 = vmul.f32 %v4540_v9, %v1094_v62  ;;  %v1622_v25 = vadd.f32 %v4379_v10, %v4496_v28 }
 0x2a7   : > { %v4666_v46 = vpop.xlane.xlu0 %1357  ;;  %v1324_v28 = vmul.f32 %v4540_v9, %v1190_v26  ;;  %v1208_v26 = vmax.f32 %v4315_v21, 0.0 }
 0x2a8   : > { %1437 = vadd.xlane.f32.xlu1 %v1262_v51  ;;  %v1046_v51 = vadd.f32 %v4173_v19, %v4105_v7  ;;  %v4713_v7 = vsub.s32 %v1904_v50, %v3977_v30  ;;  %v1999_v4 = vrot.slane %v1622_v25, %v4703_v12  ;;  %v1607_v53 = vadd.f32 %v4379_v10, %v4666_v46 }
 0x2a9   : > { %v1390_v44 = vpop.xlane.xlu1 %1389  ;;  %v1207_v46 = vmax.f32 %v4311_v16, 0.0 }
 0x2aa   : > { %1501 = vadd.xlane.f32.xlu0 %v1294_v59  ;;  %v1623_v42 = vadd.f32 %v4379_v10, %v1390_v44  ;;  %v1276_v59 = vmul.f32 %v4540_v9, %v1142_v13  ;;  %v1206_v44 = vmax.f32 %v4303_v6, 0.0  ;;  %v1174_v8 = vmax.f32 %v1046_v51, 0.0 }
 0x2ab   : > { %v4674_v41 = vpop.xlane.xlu0 %1453  ;;  %v1606_v6 = vadd.f32 %v4379_v10, %v4489_v63  ;;  %v2078_v13 = vrot.slane %v1638_v24, %v4703_v12  ;;  %v1654_v51 = vadd.f32 %v4379_v10, %v4625_v35 }
 0x2ac   : > { %1469 = vadd.xlane.f32.xlu1 %v1278_v1  ;;  %v1158_v1 = vmax.f32 %v1030_v39, 0.0  ;;  %v2004_v48 = vrot.slane %v1623_v42, %v4713_v7  ;;  %v1340_v63 = vmul.f32 %v4540_v9, %v1206_v44  ;;  %v1308_v25 = vmul.f32 %v4540_v9, %v1174_v8 }
 0x2ad   : > { %v1422_v52 = vpop.xlane.xlu1 %1421  ;;  %v1908_v42 = vrot.slane %v1607_v53, %v4713_v7  ;;  %v1341_v44 = vmul.f32 %v4540_v9, %v1207_v46 }
 0x2ae   : > { %1533 = vadd.xlane.f32.xlu0 %v1310_v3  ;;  %v1639_v55 = vadd.f32 %v4379_v10, %v1422_v52  ;;  %v1292_v52 = vmul.f32 %v4540_v9, %v1158_v1 }
 0x2af   : > { %v4685_v27 = vpop.xlane.xlu0 %1517 }
 0x2b0   : > { %1565 = vadd.xlane.f32.xlu1 %v1326_v45  ;;  %v2083_v39 = vrot.slane %v1639_v55, %v4713_v7  ;;  %v1342_v55 = vmul.f32 %v4540_v9, %v1208_v26 }
 0x2b1   : > { %v4689_v57 = vpop.xlane.xlu1 %1485 }
 0x2b2   : > { %1401 = vadd.xlane.f32.xlu0 %v1244_v37 }
 0x2b3   : > { %v1386_v20 = vpop.xlane.xlu0 %1385 }
 0x2b4   : > { %v1621_v54 = vadd.f32 %v4379_v10, %v1386_v20  ;;  %1369 = vadd.xlane.f32.xlu1 %v1228_v58  ;;  %v1901_v20 = vrot.slane %v1606_v6, %v4703_v12  ;;  %v1687_v6 = vadd.f32 %v4379_v10, %v4685_v27 }
 0x2b5   : > { %v4708_v43 = vpop.xlane.xlu1 %1549 }
 0x2b6   : > { %v1994_v19 = vrot.slane %v1621_v54, %v4695_v36  ;;  %1465 = vadd.xlane.f32.xlu0 %v1276_v59  ;;  %v1655_v54 = vadd.f32 %v4379_v10, %v4674_v41  ;;  %v2320_v46 = vrot.slane %v1687_v6, %v4713_v7 }
 0x2b7   : > { %v1418_v3 = vpop.xlane.xlu0 %1417 }
 0x2b8   : > { %v1995_v61 = vsel %vm1895_vm5, %v1994_v19, %v4547_v23  ;;  %v1637_v45 = vadd.f32 %v4379_v10, %v1418_v3  ;;  %1433 = vadd.xlane.f32.xlu1 %v1260_v60  ;;  %v2162_v3 = vrot.slane %v1655_v54, %v4713_v7 }
 0x2b9   : > { %v2000_v15 = vsel %vm1902_vm6, %v1999_v4, %v1995_v61  ;;  %v1354_v62 = vpop.xlane.xlu1 %1353  ;;  %v1670_v61 = vadd.f32 %v4379_v10, %v4510_v34  ;;  %v1671_v34 = vadd.f32 %v4379_v10, %v4689_v57 }
 0x2ba   : > { %v2073_v49 = vrot.slane %v1637_v45, %v4695_v36  ;;  %v1605_v37 = vadd.f32 %v4379_v10, %v1354_v62  ;;  %1561 = vadd.xlane.f32.xlu0 %v1324_v28  ;;  %v4734_v23 = vsel %vm1909_vm7, %v2004_v48, %v2000_v15  ;;  %v1686_v45 = vadd.f32 %v4379_v10, %v4649_v33 }
 0x2bb   : > { %v1570_v14 = vpop.xlane.xlu0 %1569 }
 0x2bc   : > { %v2074_v50 = vsel %vm1895_vm5, %v2073_v49, %v4572_v22  ;;  %v1894_v58 = vrot.slane %v1605_v37, %v4695_v36  ;;  %1497 = vadd.xlane.f32.xlu1 %v1292_v52  ;;  %v1713_v1 = vadd.f32 %v4379_v10, %v1570_v14 }
 0x2bd   : > { %v2079_v16 = vsel %vm1902_vm6, %v2078_v13, %v2074_v50  ;;  %v1450_v21 = vpop.xlane.xlu1 %1449  ;;  %v2315_v13 = vrot.slane %v1686_v45, %v4703_v12  ;;  %v2241_v50 = vrot.slane %v1671_v34, %v4713_v7 }
 0x2be   : > { %v1896_v22 = vsel %vm1895_vm5, %v1894_v58, %v4555_v5  ;;  %v1653_v59 = vadd.f32 %v4379_v10, %v1450_v21  ;;  %1593 = vadd.xlane.f32.xlu0 %v1340_v63  ;;  %v4756_v60 = vsel %vm1909_vm7, %v2083_v39, %v2079_v16  ;;  %v2157_v5 = vrot.slane %v1654_v51, %v4703_v12 }
 0x2bf   : > { %v1903_v28 = vsel %vm1902_vm6, %v1901_v20, %v1896_v22  ;;  %v1572_v35 = vpop.xlane.xlu0 %1571  ;;  %v2448_v62 = vrot.slane %v1713_v1, %v4394_v17  ;;  %v1702_v39 = vadd.f32 %v4379_v10, %v4658_v11  ;;  %v1703_v58 = vadd.f32 %v4379_v10, %v4708_v43 }
 0x2c0   : > { %v2152_v19 = vrot.slane %v1653_v59, %v4695_v36  ;;  %1529 = vadd.xlane.f32.xlu1 %v1308_v25  ;;  %v4763_v41 = vsel %vm1909_vm7, %v1908_v42, %v1903_v28  ;;  %v1714_v4 = vadd.f32 %v4379_v10, %v1572_v35 }
 0x2c1   : > { %v1568_v24 = vpop.xlane.xlu1 %1567 }
 0x2c2   : > { %v2153_v8 = vsel %vm1895_vm5, %v2152_v19, %v4595_v47  ;;  %v1712_v48 = vadd.f32 %v4379_v10, %v1568_v24  ;;  %1595 = vadd.xlane.f32.xlu0 %v1341_v44  ;;  %v2453_v33 = vrot.slane %v1714_v4, %v4403_v38 }
 0x2c3   : > { %v2158_v53 = vsel %vm1902_vm6, %v2157_v5, %v2153_v8  ;;  %v1514_v15 = vpop.xlane.xlu0 %1513 }
 0x2c4   : > { %v2444_v47 = vrot.slane %v1712_v48, %v4390_v29  ;;  %v1685_v49 = vadd.f32 %v4379_v10, %v1514_v15  ;;  %1597 = vadd.xlane.f32.xlu1 %v1342_v55  ;;  %v4783_v9 = vsel %vm1909_vm7, %v2162_v3, %v2158_v53  ;;  %v2236_v29 = vrot.slane %v1670_v61, %v4703_v12 }
 0x2c5   : > { %v1482_v37 = vpop.xlane.xlu1 %1481  ;;  %v1911_v15 = vadd.s32 4294967232, %v4373_v18 }
 0x2c6   : > { %v2449_v27 = vsel %vm1867_vm1, %v2448_v62, %v2444_v47  ;;  %v2310_v52 = vrot.slane %v1685_v49, %v4695_v36  ;;  %v1669_v17 = vadd.f32 %v4379_v10, %v1482_v37  ;;  %vm2522_vm1 = vcmask 1042434  }
 0x2c7   : > { %v1574_v14 = vpop.xlane.xlu0 %1573  ;;  %v2454_v63 = vsel %vm1874_vm2, %v2453_v33, %v2449_v27  ;;  %v1914_v34 = vsub.s32 %v1911_v15, %v3977_v30  ;;  %vm2524_vm2 = vcmask 1043459  }
 0x2c8   : > { %v2311_v57 = vsel %vm1895_vm5, %v2310_v52, %v4652_v31  ;;  %v2231_v38 = vrot.slane %v1669_v17, %v4695_v36  ;;  %v1715_v26 = vadd.f32 %v4379_v10, %v1574_v14 }
 0x2c9   : > { %v2316_v25 = vsel %vm1902_vm6, %v2315_v13, %v2311_v57  ;;  %v1546_v20 = vpop.xlane.xlu1 %1545 }
 0x2ca   : > { %v2232_v51 = vsel %vm1895_vm5, %v2231_v38, %v4613_v56  ;;  %v2458_v31 = vrot.slane %v1715_v26, %v4420_v2  ;;  %v1701_v42 = vadd.f32 %v4379_v10, %v1546_v20  ;;  %v4810_v16 = vsel %vm1909_vm7, %v2320_v46, %v2316_v25 }
 0x2cb   : > { %v2237_v11 = vsel %vm1902_vm6, %v2236_v29, %v2232_v51  ;;  %v1576_v21 = vpop.xlane.xlu0 %1575  ;;  %v2394_v56 = vrot.slane %v1702_v39, %v4703_v12  ;;  %v2399_v2 = vrot.slane %v1703_v58, %v4713_v7 }
 0x2cc   : > { %v2459_v54 = vsel %vm1881_vm3, %v2458_v31, %v2454_v63  ;;  %v2389_v43 = vrot.slane %v1701_v42, %v4695_v36  ;;  %v1716_v22 = vadd.f32 %v4379_v10, %v1576_v21  ;;  %v2242_v59 = vsel %vm1909_vm7, %v2241_v50, %v2237_v11 }
 0x2cd   : > { %v4818_v28 = vpop.xlane.xlu1 %1363  ;;  %vm2526_vm3 = vcmask 1044484  }
 0x2ce   : > { %v2390_v35 = vsel %vm1895_vm5, %v2389_v43, %v4661_v40  ;;  %v2463_v1 = vrot.slane %v1716_v22, %v4522_v32 }
 0x2cf   : > { %v2395_v19 = vsel %vm1902_vm6, %v2394_v56, %v2390_v35  ;;  %v1578_v44 = vpop.xlane.xlu0 %1577 }
 0x2d0   : > { %v2464_v5 = vsel %vm1888_vm4, %v2463_v1, %v2459_v54  ;;  %v1717_v4 = vadd.f32 %v4379_v10, %v1578_v44  ;;  %v2400_v24 = vsel %vm1909_vm7, %v2399_v2, %v2395_v19  ;;  %vm2528_vm4 = vcmask 1045509  }
 0x2d1   : > { %v4828_v3 = vpop.xlane.xlu1 %1427 }
 0x2d2   : > { %v2468_v8 = vrot.slane %v1717_v4, %v4695_v36 }
 0x2d3   : > { %v1580_v48 = vpop.xlane.xlu0 %1579 }
 0x2d4   : > { %v2469_v55 = vsel %vm1895_vm5, %v2468_v8, %v2464_v5  ;;  %v1718_v40 = vadd.f32 %v4379_v10, %v1580_v48  ;;  %v1932_v48 = vadd.s32 4294967208, %v4373_v18  ;;  %vm2530_vm5 = vcmask 1046534  }
 0x2d5   : > { %v4833_v61 = vpop.xlane.xlu1 %1491 }
 0x2d6   : > { %v2473_v32 = vrot.slane %v1718_v40, %v4703_v12 }
 0x2d7   : > { %v1582_v45 = vpop.xlane.xlu0 %1581 }
 0x2d8   : > { %v2474_v6 = vsel %vm1902_vm6, %v2473_v32, %v2469_v55  ;;  %v1719_v53 = vadd.f32 %v4379_v10, %v1582_v45  ;;  %v1610_v32 = vadd.f32 %v4379_v10, %v4818_v28  ;;  %v1674_v28 = vadd.f32 %v4379_v10, %v4833_v61 }
 0x2d9   : > { %v4839_v62 = vpop.xlane.xlu1 %1555  ;;  %vm2532_vm6 = vcmask 1047559  }
 0x2da   : > { %v2478_v36 = vrot.slane %v1719_v53, %v4713_v7 }
 0x2db   : > { %v4842_v47 = vpop.xlane.xlu0 %1395 }
 0x2dc   : > { %v2479_v49 = vsel %vm1909_vm7, %v2478_v36, %v2474_v6  ;;  %v4901_v6 = vsub.s32 %v1932_v48, %v3977_v30  ;;  %vm2537_vm7 = vcmp.lt.s32.totalorder %v4373_v18, 16 }
 0x2dd   : > { %v1360_v33 = vpop.xlane.xlu1 %1359 }
 0x2de   : > { %v1608_v12 = vadd.f32 %v4379_v10, %v1360_v33 }
 0x2df   : > { %v4847_v37 = vpop.xlane.xlu0 %1459 }
 0x2e0   : > { %v1915_v27 = vrot.slane %v1608_v12, %v1914_v34 }
 0x2e1   : > { %v1424_v52 = vpop.xlane.xlu1 %1423 }
 0x2e2   : > { %v1917_v17 = vsel %vm1916_vm8, %v1915_v27, %v4763_v41  ;;  %v1640_v29 = vadd.f32 %v4379_v10, %v1424_v52 }
 0x2e3   : > { %v4852_v7 = vpop.xlane.xlu0 %1523 }
 0x2e4   : > { %v2088_v13 = vrot.slane %v1640_v29, %v1914_v34 }
 0x2e5   : > { %v1488_v14 = vpop.xlane.xlu1 %1487 }
 0x2e6   : > { %v4856_v63 = vsel %vm1916_vm8, %v2088_v13, %v4756_v60  ;;  %v1672_v46 = vadd.f32 %v4379_v10, %v1488_v14 }
 0x2e7   : > { %v4859_v57 = vpop.xlane.xlu0 %1587 }
 0x2e8   : > { %v2246_v38 = vrot.slane %v1672_v46, %v1914_v34 }
 0x2e9   : > { %v1552_v26 = vpop.xlane.xlu1 %1551 }
 0x2ea   : > { %v4862_v39 = vsel %vm1916_vm8, %v2246_v38, %v2242_v59  ;;  %v1704_v41 = vadd.f32 %v4379_v10, %v1552_v26 }
 0x2eb   : > { %v1392_v50 = vpop.xlane.xlu0 %1391 }
 0x2ec   : > { %v2404_v58 = vrot.slane %v1704_v41, %v1914_v34  ;;  %v1624_v25 = vadd.f32 %v4379_v10, %v1392_v50 }
 0x2ed   : > { %v1366_v20 = vpop.xlane.xlu1 %1365 }
 0x2ee   : > { %v4867_v51 = vsel %vm1916_vm8, %v2404_v58, %v2400_v24  ;;  %v2009_v60 = vrot.slane %v1624_v25, %v1914_v34  ;;  %v1925_v24 = vadd.s32 4294967216, %v4373_v18  ;;  %v1611_v53 = vadd.f32 %v4379_v10, %v1366_v20 }
 0x2ef   : > { %v1456_v31 = vpop.xlane.xlu0 %1455  ;;  %v1706_v58 = vadd.f32 %v4379_v10, %v4839_v62 }
 0x2f0   : > { %v4871_v42 = vsel %vm1916_vm8, %v2009_v60, %v4734_v23  ;;  %v1656_v11 = vadd.f32 %v4379_v10, %v1456_v31  ;;  %v4896_v40 = vsub.s32 %v1925_v24, %v3977_v30  ;;  %v1936_v27 = vrot.slane %v1611_v53, %v4901_v6 }
 0x2f1   : > { %v1430_v21 = vpop.xlane.xlu1 %1429 }
 0x2f2   : > { %v2167_v54 = vrot.slane %v1656_v11, %v1914_v34  ;;  %v1929_v33 = vrot.slane %v1610_v32, %v4896_v40  ;;  %v1643_v52 = vadd.f32 %v4379_v10, %v1430_v21 }
 0x2f3   : > { %v1520_v43 = vpop.xlane.xlu0 %1519 }
 0x2f4   : > { %v4876_v22 = vsel %vm1916_vm8, %v2167_v54, %v4783_v9  ;;  %v1688_v59 = vadd.f32 %v4379_v10, %v1520_v43  ;;  %v1918_v9 = vadd.s32 4294967224, %v4373_v18  ;;  %v2103_v60 = vrot.slane %v1643_v52, %v4901_v6 }
 0x2f5   : > { %v1494_v56 = vpop.xlane.xlu1 %1493 }
 0x2f6   : > { %v2325_v2 = vrot.slane %v1688_v59, %v1914_v34  ;;  %v1675_v25 = vadd.f32 %v4379_v10, %v1494_v56 }
 0x2f7   : > { %v1584_v35 = vpop.xlane.xlu0 %1583 }
 0x2f8   : > { %v4881_v1 = vsel %vm1916_vm8, %v2325_v2, %v4810_v16  ;;  %v1720_v23 = vadd.f32 %v4379_v10, %v1584_v35  ;;  %v4893_v16 = vsub.s32 %v1918_v9, %v3977_v30 }
 0x2f9   : > { %v1558_v19 = vpop.xlane.xlu1 %1557 }
 0x2fa   : > { %v2483_v44 = vrot.slane %v1720_v23, %v1914_v34 }
 0x2fb   : > { %v1398_v5 = vpop.xlane.xlu0 %1397 }
 0x2fc   : > { %v4885_v4 = vsel %vm1916_vm8, %v2483_v44, %v2479_v49  ;;  %v1642_v49 = vadd.f32 %v4379_v10, %v4828_v3  ;;  %v1626_v3 = vadd.f32 %v4379_v10, %v4842_v47  ;;  %v1627_v14 = vadd.f32 %v4379_v10, %v1398_v5 }
 0x2fd   : > { %v4889_v8 = vpop.xlane.xlu1 %1589  ;;  %v1658_v47 = vadd.f32 %v4379_v10, %v4847_v37  ;;  %v2261_v44 = vrot.slane %v1675_v25, %v4901_v6  ;;  %v1707_v5 = vadd.f32 %v4379_v10, %v1558_v19 }
 0x2fe   : > { %v2098_v61 = vrot.slane %v1642_v49, %v4896_v40  ;;  %v2019_v54 = vrot.slane %v1626_v3, %v4896_v40  ;;  %v2024_v43 = vrot.slane %v1627_v14, %v4901_v6  ;;  %v1722_v3 = vadd.f32 %v4379_v10, %v4859_v57 }
 0x2ff   : > { %v1462_v55 = vpop.xlane.xlu0 %1461  ;;  %v2177_v23 = vrot.slane %v1658_v47, %v4896_v40  ;;  %v1723_v14 = vadd.f32 %v4379_v10, %v4889_v8 }
 0x300   : > { %v1659_v62 = vadd.f32 %v4379_v10, %v1462_v55  ;;  %v2493_v47 = vrot.slane %v1722_v3, %v4896_v40 }
 0x301   : > { %v1362_v45 = vpop.xlane.xlu1 %1361 }
 0x302   : > { %v1609_v15 = vadd.f32 %v4379_v10, %v1362_v45  ;;  %v1690_v45 = vadd.f32 %v4379_v10, %v4852_v7  ;;  %v2182_v53 = vrot.slane %v1659_v62, %v4901_v6 }
 0x303   : > { %v1526_v36 = vpop.xlane.xlu0 %1525 }
 0x304   : > { %v1922_v34 = vrot.slane %v1609_v15, %v4893_v16  ;;  %v1691_v19 = vadd.f32 %v4379_v10, %v1526_v36  ;;  %v2419_v36 = vrot.slane %v1707_v5, %v4901_v6  ;;  %v1939_v5 = vadd.s32 4294967200, %v4373_v18 }
 0x305   : > { %v1426_v12 = vpop.xlane.xlu1 %1425 }
 0x306   : > { %v1924_v29 = vsel %vm1923_vm9, %v1922_v34, %v1917_v17  ;;  %v1641_v13 = vadd.f32 %v4379_v10, %v1426_v12  ;;  %v2256_v17 = vrot.slane %v1674_v28, %v4896_v40  ;;  %v2414_v12 = vrot.slane %v1706_v58, %v4896_v40 }
 0x307   : > { %v1931_v46 = vsel %vm1930_vm10, %v1929_v33, %v1924_v29  ;;  %v1394_v38 = vpop.xlane.xlu0 %1393 }
 0x308   : > { %v2093_v26 = vrot.slane %v1641_v13, %v4893_v16  ;;  %v1625_v41 = vadd.f32 %v4379_v10, %v1394_v38  ;;  %v4923_v50 = vsel %vm1937_vm11, %v1936_v27, %v1931_v46  ;;  %v2335_v13 = vrot.slane %v1690_v45, %v4896_v40 }
 0x309   : > { %v1490_v20 = vpop.xlane.xlu1 %1489 }
 0x30a   : > { %v2094_v31 = vsel %vm1923_vm9, %v2093_v26, %v4856_v63  ;;  %v2014_v11 = vrot.slane %v1625_v41, %v4893_v16  ;;  %v1673_v21 = vadd.f32 %v4379_v10, %v1490_v20  ;;  %v2498_v20 = vrot.slane %v1723_v14, %v4901_v6 }
 0x30b   : > { %v2099_v37 = vsel %vm1930_vm10, %v2098_v61, %v2094_v31  ;;  %v1458_v59 = vpop.xlane.xlu0 %1457  ;;  %v2340_v61 = vrot.slane %v1691_v19, %v4901_v6 }
 0x30c   : > { %v2015_v56 = vsel %vm1923_vm9, %v2014_v11, %v4871_v42  ;;  %v2251_v2 = vrot.slane %v1673_v21, %v4893_v16  ;;  %v1657_v63 = vadd.f32 %v4379_v10, %v1458_v59  ;;  %v4945_v35 = vsel %vm1937_vm11, %v2103_v60, %v2099_v37 }
 0x30d   : > { %v2020_v9 = vsel %vm1930_vm10, %v2019_v54, %v2015_v56  ;;  %v1554_v24 = vpop.xlane.xlu1 %1553 }
 0x30e   : > { %v2252_v48 = vsel %vm1923_vm9, %v2251_v2, %v4862_v39  ;;  %v2172_v42 = vrot.slane %v1657_v63, %v4893_v16  ;;  %v1705_v55 = vadd.f32 %v4379_v10, %v1554_v24  ;;  %v4956_v32 = vsel %vm1937_vm11, %v2024_v43, %v2020_v9 }
 0x30f   : > { %v2257_v15 = vsel %vm1930_vm10, %v2256_v17, %v2252_v48  ;;  %v1522_v49 = vpop.xlane.xlu0 %1521  ;;  %v1960_v9 = vadd.s32 4294967176, %v4373_v18 }
 0x310   : > { %v2173_v39 = vsel %vm1923_vm9, %v2172_v42, %v4876_v22  ;;  %v2409_v34 = vrot.slane %v1705_v55, %v4893_v16  ;;  %v1689_v33 = vadd.f32 %v4379_v10, %v1522_v49  ;;  %v4968_v28 = vsel %vm1937_vm11, %v2261_v44, %v2257_v15 }
 0x311   : > { %v2178_v7 = vsel %vm1930_vm10, %v2177_v23, %v2173_v39  ;;  %v1372_v27 = vpop.xlane.xlu1 %1371  ;;  %v1953_v23 = vadd.s32 4294967184, %v4373_v18  ;;  %v1946_v55 = vadd.s32 4294967192, %v4373_v18  ;;  %v3308_v18 = vld [vmem:[%s3929_s17 + $0x18] sm:$0xff]  }
 0x312   : > { %v2410_v52 = vsel %vm1923_vm9, %v2409_v34, %v4867_v51  ;;  %v2330_v29 = vrot.slane %v1689_v33, %v4893_v16  ;;  %v4977_v22 = vsel %vm1937_vm11, %v2182_v53, %v2178_v7  ;;  %v5021_v45 = vadd.f32 %v4379_v10, %v1372_v27 }
 0x313   : > { %v2415_v46 = vsel %vm1930_vm10, %v2414_v12, %v2410_v52  ;;  %v1586_v38 = vpop.xlane.xlu0 %1585  ;;  %v5015_v48 = vsub.s32 %v1953_v23, %v3977_v30  ;;  %v5024_v53 = vsub.s32 %v1939_v5, %v3977_v30  ;;  %v5031_v34 = vsub.s32 %v1960_v9, %v3977_v30 }
 0x314   : > { %v2331_v51 = vsel %vm1923_vm9, %v2330_v29, %v4881_v1  ;;  %v1721_v26 = vadd.f32 %v4379_v10, %v1586_v38  ;;  %v4990_v41 = vsel %vm1937_vm11, %v2419_v36, %v2415_v46  ;;  %v5048_v29 = vsub.s32 %v1946_v55, %v3977_v30 }
 0x315   : > { %v2336_v17 = vsel %vm1930_vm10, %v2335_v13, %v2331_v51  ;;  %v1436_v58 = vpop.xlane.xlu1 %1435  ;;  %v1957_v13 = vrot.slane %v5021_v45, %v5015_v48 }
 0x316   : > { %v2488_v57 = vrot.slane %v1721_v26, %v4893_v16  ;;  %v4995_v8 = vsel %vm1937_vm11, %v2340_v61, %v2336_v17  ;;  %v5036_v12 = vadd.f32 %v4379_v10, %v1436_v58 }
 0x317   : > { %v1404_v25 = vpop.xlane.xlu0 %1403 }
 0x318   : > { %v2489_v1 = vsel %vm1923_vm9, %v2488_v57, %v4885_v4  ;;  %v1630_v7 = vadd.f32 %v4379_v10, %v1404_v25  ;;  %v2118_v26 = vrot.slane %v5036_v12, %v5015_v48 }
 0x319   : > { %v2494_v60 = vsel %vm1930_vm10, %v2493_v47, %v2489_v1  ;;  %v1532_v31 = vpop.xlane.xlu1 %1531 }
 0x31a   : > { %v5003_v11 = vsel %vm1937_vm11, %v2498_v20, %v2494_v60  ;;  %v5040_v27 = vadd.f32 %v4379_v10, %v1532_v31  ;;  %v2039_v17 = vrot.slane %v1630_v7, %v5015_v48 }
 0x31b   : > { %v1468_v21 = vpop.xlane.xlu0 %1467 }
 0x31c   : > { %v5043_v36 = vadd.f32 %v4379_v10, %v1468_v21  ;;  %v2355_v58 = vrot.slane %v5040_v27, %v5015_v48 }
 0x31d   : > { %v1564_v54 = vpop.xlane.xlu1 %1563 }
 0x31e   : > { %v2197_v47 = vrot.slane %v5043_v36, %v5015_v48  ;;  %v5069_v25 = vadd.f32 %v4379_v10, %v1564_v54 }
 0x31f   : > { %v1500_v16 = vpop.xlane.xlu0 %1499 }
 0x320   : > { %v5053_v3 = vadd.f32 %v4379_v10, %v1500_v16 }
 0x321   : > { %v1368_v43 = vpop.xlane.xlu1 %1367 }
 0x322   : > { %v1612_v19 = vadd.f32 %v4379_v10, %v1368_v43  ;;  %v2276_v31 = vrot.slane %v5053_v3, %v5015_v48 }
 0x323   : > { %v1400_v62 = vpop.xlane.xlu0 %1399 }
 0x324   : > { %v1628_v15 = vadd.f32 %v4379_v10, %v1400_v62  ;;  %v1943_v14 = vrot.slane %v1612_v19, %v5024_v53 }
 0x325   : > { %v1432_v37 = vpop.xlane.xlu1 %1431 }
 0x326   : > { %v1644_v49 = vadd.f32 %v4379_v10, %v1432_v37  ;;  %v2029_v46 = vrot.slane %v1628_v15, %v5024_v53  ;;  %v1945_v21 = vsel %vm1944_vm12, %v1943_v14, %v4923_v50 }
 0x327   : > { %v1464_v59 = vpop.xlane.xlu0 %1463 }
 0x328   : > { %v1660_v39 = vadd.f32 %v4379_v10, %v1464_v59  ;;  %v2108_v38 = vrot.slane %v1644_v49, %v5024_v53  ;;  %v2030_v54 = vsel %vm1944_vm12, %v2029_v46, %v4956_v32 }
 0x329   : > { %v1496_v40 = vpop.xlane.xlu1 %1495 }
 0x32a   : > { %v2187_v61 = vrot.slane %v1660_v39, %v5024_v53  ;;  %v1676_v30 = vadd.f32 %v4379_v10, %v1496_v40  ;;  %v2109_v62 = vsel %vm1944_vm12, %v2108_v38, %v4945_v35 }
 0x32b   : > { %v1528_v56 = vpop.xlane.xlu0 %1527 }
 0x32c   : > { %v2188_v37 = vsel %vm1944_vm12, %v2187_v61, %v4977_v22  ;;  %v2266_v59 = vrot.slane %v1676_v30, %v5024_v53 }
 0x32d   : > { %v5005_v2 = vpop.xlane.xlu1 %1591 }
 0x32e   : > { %v2267_v46 = vsel %vm1944_vm12, %v2266_v59, %v4968_v28 }
 0x32f   : > { %v1560_v6 = vpop.xlane.xlu0 %1559 }
 0x330   : > { %v1708_v32 = vadd.f32 %v4379_v10, %v1560_v6  ;;  %v1724_v6 = vadd.f32 %v4379_v10, %v5005_v2 }
 0x331   : > { %v1374_v63 = vpop.xlane.xlu1 %1373 }
 0x332   : > { %v1615_v20 = vadd.f32 %v4379_v10, %v1374_v63  ;;  %v5087_v63 = vadd.f32 %v4379_v10, %v1528_v56  ;;  %v2424_v2 = vrot.slane %v1708_v32, %v5024_v53  ;;  %v2503_v28 = vrot.slane %v1724_v6, %v5024_v53 }
 0x333   : > { %v1406_v4 = vpop.xlane.xlu0 %1405 }
 0x334   : > { %v1631_v1 = vadd.f32 %v4379_v10, %v1406_v4  ;;  %v1964_v35 = vrot.slane %v1615_v20, %v5031_v34  ;;  %v2345_v61 = vrot.slane %v5087_v63, %v5024_v53  ;;  %v2504_v3 = vsel %vm1944_vm12, %v2503_v28, %v5003_v11  ;;  %v3316_v28 = vld [vmem:[#allocation12 + $0x18] sm:$0xff]  }
 0x335   : > { %v5008_v44 = vpop.xlane.xlu1 %1437 }
 0x336   : > { %v2044_v5 = vrot.slane %v1631_v1, %v5031_v34  ;;  %v1647_v56 = vadd.f32 %v4379_v10, %v5008_v44 }
 0x337   : > { %v5012_v24 = vpop.xlane.xlu0 %1501 }
 0x338   : > { %v2123_v30 = vrot.slane %v1647_v56, %v5031_v34 }
 0x339   : > { %v5017_v42 = vpop.xlane.xlu1 %1469 }
 0x33a   : > { %v1663_v15 = vadd.f32 %v4379_v10, %v5017_v42  ;;  %v1679_v42 = vadd.f32 %v4379_v10, %v5012_v24 }
 0x33b   : > { %v5033_v33 = vpop.xlane.xlu0 %1533 }
 0x33c   : > { %v2281_v53 = vrot.slane %v1679_v42, %v5031_v34  ;;  %v3309_v42 = vld [vmem:[%s3929_s17 + $0x20] sm:$0xff]  }
 0x33d   : > { %v5045_v52 = vpop.xlane.xlu1 %1565 }
 0x33f   : > { %v1402_v51 = vpop.xlane.xlu0 %1401 }
 0x340   : > { %v1629_v57 = vadd.f32 %v4379_v10, %v1402_v51 }
 0x341   : > { %v1370_v60 = vpop.xlane.xlu1 %1369 }
 0x342   : > { %v2034_v16 = vrot.slane %v1629_v57, %v5048_v29  ;;  %v1613_v43 = vadd.f32 %v4379_v10, %v1370_v60  ;;  %v2202_v60 = vrot.slane %v1663_v15, %v5031_v34 }
 0x343   : > { %v1466_v40 = vpop.xlane.xlu0 %1465 }
 0x344   : > { %v2035_v50 = vsel %vm1951_vm13, %v2034_v16, %v2030_v54  ;;  %v1950_v4 = vrot.slane %v1613_v43, %v5048_v29  ;;  %v1661_v23 = vadd.f32 %v4379_v10, %v1466_v40  ;;  %v2425_v54 = vsel %vm1944_vm12, %v2424_v2, %v4990_v41 }
 0x345   : > { %v2040_v22 = vsel %vm1958_vm14, %v2039_v17, %v2035_v50  ;;  %v1434_v9 = vpop.xlane.xlu1 %1433 }
 0x346   : > { %v1952_v55 = vsel %vm1951_vm13, %v1950_v4, %v1945_v21  ;;  %v2192_v45 = vrot.slane %v1661_v23, %v5048_v29  ;;  %v1645_v19 = vadd.f32 %v4379_v10, %v1434_v9  ;;  %v2045_v49 = vsel %vm1965_vm15, %v2044_v5, %v2040_v22 }
 0x347   : > { %v1959_v39 = vsel %vm1958_vm14, %v1957_v13, %v1952_v55  ;;  %v1562_v12 = vpop.xlane.xlu0 %1561  ;;  %v2346_v22 = vsel %vm1944_vm12, %v2345_v61, %v4995_v8  ;;  %v3312_v61 = vld [vmem:[%s3929_s17 + $0x38] sm:$0xff]  }
 0x348   : > { %v1966_v44 = vsel %vm1965_vm15, %v1964_v35, %v1959_v39  ;;  %v2193_v7 = vsel %vm1951_vm13, %v2192_v45, %v2188_v37  ;;  %v2113_v36 = vrot.slane %v1645_v19, %v5048_v29  ;;  %v1709_v14 = vadd.f32 %v4379_v10, %v1562_v12 }
 0x349   : > { %v2521_v38 = vsel %vm2520_vm0, %v2045_v49, %v1966_v44  ;;  %v1498_v13 = vpop.xlane.xlu1 %1497  ;;  %v2198_v57 = vsel %vm1958_vm14, %v2197_v47, %v2193_v7  ;;  %v1695_v47 = vadd.f32 %v4379_v10, %v5033_v33  ;;  %v1711_v37 = vadd.f32 %v4379_v10, %v5045_v52  ;;  %v3305_v44 = vld [vmem:[%s3929_s17] sm:$0xff]   ;;  %v3307_v7 = vld [vmem:[%s3929_s17 + $0x10] sm:$0xff]  }
 0x34a   : > { %v2114_v51 = vsel %vm1951_vm13, %v2113_v36, %v2109_v62  ;;  %v1677_v17 = vadd.f32 %v4379_v10, %v1498_v13  ;;  %v2429_v24 = vrot.slane %v1709_v14, %v5048_v29  ;;  %v2203_v59 = vsel %vm1965_vm15, %v2202_v60, %v2198_v57  ;;  %3134 = vmatpush3.bf16.msra.mxu0 %v3305_v44  ;;  %v3311_v13 = vld [vmem:[%s3929_s17 + $0x30] sm:$0xff]   ;;  %v3317_v57 = vld [vmem:[#allocation12 + $0x20] sm:$0xff]  }
 0x34b   : > { %v2119_v20 = vsel %vm1958_vm14, %v2118_v26, %v2114_v51  ;;  %v1594_v1 = vpop.xlane.xlu0 %1593  ;;  %v2434_v52 = vrot.slane %v5069_v25, %v5015_v48  ;;  %v2439_v19 = vrot.slane %v1711_v37, %v5031_v34  ;;  %3135 = vmatprep.subr.bf16.mxu0 %v3606_v0  ;;  %v3314_v51 = vld [vmem:[#allocation12 + $0x8] sm:$0xff]  }
 0x34c   : > { %v2124_v21 = vsel %vm1965_vm15, %v2123_v30, %v2119_v20  ;;  %v2271_v16 = vrot.slane %v1677_v17, %v5048_v29  ;;  %v1725_v43 = vadd.f32 %v4379_v10, %v1594_v1  ;;  %v2430_v50 = vsel %vm1951_vm13, %v2429_v24, %v2425_v54  ;;  %v3313_v30 = vld [vmem:[#allocation12] sm:$0xff]   ;;  %v3315_v17 = vld [vmem:[#allocation12 + $0x10] sm:$0xff]   ;;  %v3318_v20 = vld [vmem:[#allocation12 + $0x28] sm:$0xff]  }
 0x34d   : > { %v2523_v26 = vsel %vm2522_vm1, %v2124_v21, %v2521_v38  ;;  %v1530_v62 = vpop.xlane.xlu1 %1529  ;;  %v2435_v55 = vsel %vm1958_vm14, %v2434_v52, %v2430_v50  ;;  %v3310_v38 = vld [vmem:[%s3929_s17 + $0x28] sm:$0xff]   ;;  %3154 = vmatpush3.bf16.msra.mxu1 %v3313_v30  ;;  %v3319_v24 = vld [vmem:[#allocation12 + $0x30] sm:$0xff]   ;;  %v3320_v1 = vld [vmem:[#allocation12 + $0x38] sm:$0xff]  }
 0x34e   : > { %v2272_v40 = vsel %vm1951_vm13, %v2271_v16, %v2267_v46  ;;  %v1693_v63 = vadd.f32 %v4379_v10, %v1530_v62  ;;  %v2508_v33 = vrot.slane %v1725_v43, %v5048_v29  ;;  %v2525_v23 = vsel %vm2524_vm2, %v2203_v59, %v2523_v26  ;;  %3155 = vmatprep.subr.bf16.mxu1 %v3606_v0 }
 0x34f   : > { %v2277_v41 = vsel %vm1958_vm14, %v2276_v31, %v2272_v40  ;;  %v1596_v4 = vpop.xlane.xlu0 %1595  ;;  %v2360_v31 = vrot.slane %v1695_v47, %v5031_v34 }
 0x350   : > { %v2282_v32 = vsel %vm1965_vm15, %v2281_v53, %v2277_v41  ;;  %v2350_v35 = vrot.slane %v1693_v63, %v5048_v29  ;;  %v1726_v5 = vadd.f32 %v4379_v10, %v1596_v4  ;;  %v2509_v8 = vsel %vm1951_vm13, %v2508_v33, %v2504_v3 }
 0x351   : > { %v1598_v9 = vpop.xlane.xlu1 %1597  ;;  %v2527_v56 = vsel %vm2526_vm3, %v2282_v32, %v2525_v23  ;;  %3156 = vmatpush3.bf16.msra.mxu1 %v3314_v51 }
 0x352   : > { %v2351_v25 = vsel %vm1951_vm13, %v2350_v35, %v2346_v22  ;;  %v2513_v45 = vrot.slane %v1726_v5, %v5015_v48  ;;  %v1727_v29 = vadd.f32 %v4379_v10, %v1598_v9  ;;  %v2440_v10 = vsel %vm1965_vm15, %v2439_v19, %v2435_v55  ;;  %3157 = vmatprep.subr.bf16.mxu1 %v3606_v0 }
 0x353   : > { %v2356_v11 = vsel %vm1958_vm14, %v2355_v58, %v2351_v25 }
 0x354   : > { %v2514_v6 = vsel %vm1958_vm14, %v2513_v45, %v2509_v8  ;;  %v2518_v15 = vrot.slane %v1727_v29, %v5031_v34  ;;  %v2361_v49 = vsel %vm1965_vm15, %v2360_v31, %v2356_v11  ;;  %v3306_v34 = vld [vmem:[%s3929_s17 + $0x8] sm:$0xff]  }
 0x355   : > { %v2529_v39 = vsel %vm2528_vm4, %v2361_v49, %v2527_v56  ;;  %3136 = vmatpush3.bf16.msra.mxu0 %v3306_v34  ;;  %3158 = vmatpush3.bf16.msra.mxu1 %v3315_v17 }
 0x356   : > { %v2519_v48 = vsel %vm1965_vm15, %v2518_v15, %v2514_v6  ;;  %v2531_v27 = vsel %vm2530_vm5, %v2440_v10, %v2529_v39  ;;  %3137 = vmatprep.subr.bf16.mxu0 %v3606_v0  ;;  %3159 = vmatprep.subr.bf16.mxu1 %v3606_v0 }
 0x357   : > { %v2533_v58 = vsel %vm2532_vm6, %v2519_v48, %v2531_v27 }
 0x358   : > { %v2538_v12 = vsel %vm2537_vm7, %v2533_v58, -1e+30 }
 0x359   : > { %2539 = vmax.xlane.f32.xlu0 %v2538_v12  ;;  %3138 = vmatpush3.bf16.msra.mxu0 %v3307_v7 }
 0x35a   : > { %3139 = vmatprep.subr.bf16.mxu0 %v3606_v0  ;;  %3160 = vmatpush3.bf16.msra.mxu1 %v3316_v28 }
 0x35b   : > { %3161 = vmatprep.subr.bf16.mxu1 %v3606_v0 }
 0x35d   : > { %3140 = vmatpush3.bf16.msra.mxu0 %v3308_v18 }
 0x35e   : > { %3141 = vmatprep.subr.bf16.mxu0 %v3606_v0  ;;  %3162 = vmatpush3.bf16.msra.mxu1 %v3317_v57 }
 0x35f   : > { %3163 = vmatprep.subr.bf16.mxu1 %v3606_v0 }
 0x361   : > { %3142 = vmatpush3.bf16.msra.mxu0 %v3309_v42 }
 0x362   : > { %3143 = vmatprep.subr.bf16.mxu0 %v3606_v0  ;;  %3164 = vmatpush3.bf16.msra.mxu1 %v3318_v20 }
 0x363   : > { %3165 = vmatprep.subr.bf16.mxu1 %v3606_v0 }
 0x365   : > { %3144 = vmatpush3.bf16.msra.mxu0 %v3310_v38 }
 0x366   : > { %3145 = vmatprep.subr.bf16.mxu0 %v3606_v0  ;;  %3166 = vmatpush3.bf16.msra.mxu1 %v3319_v24 }
 0x367   : > { %3167 = vmatprep.subr.bf16.mxu1 %v3606_v0 }
 0x369   : > { %3146 = vmatpush3.bf16.msra.mxu0 %v3311_v13 }
 0x36a   : > { %3147 = vmatprep.subr.bf16.mxu0 %v3606_v0  ;;  %3168 = vmatpush3.bf16.msra.mxu1 %v3320_v1 }
 0x36d   : > { %3148 = vmatpush3.bf16.msra.mxu0 %v3312_v61 }
 0x3e6   : > { %v2540_v36 = vpop.xlane.xlu0 %2539 }
 0x3e7   : > { %v2541_v14 = vsub.f32 %v2538_v12, %v2540_v36 }
 0x3e9   : > { %v2542_v46 = vmul.f32 1.442695, %v2541_v14 }
 0x3eb   : > { %3321 = vpow2.f32 %v2542_v46 }
 0x3f5   : > { %v3322_v2 = vpop.eup %3321 }
 0x3f6   : > { %2544 = vadd.xlane.f32.xlu1 %v3322_v2 }
 0x483   : > { %v2545_v60 = vpop.xlane.xlu1 %2544 }
 0x484   : > { %3323 = vrcp.f32 %v2545_v60 }
 0x48e   : > { %v3324_v21 = vpop.eup %3323 }
 0x48f   : > { %v2547_v16 = vmul.f32 %v3324_v21, %v3322_v2 }
 0x491   : > { %v2548_v43 = vpack.c.bf16 %v2547_v16, %v2547_v16  ;;  %2768 = vst [vmem:[%s515_s30] sm:$0xff] %v2547_v16 }
 0x493   : > { %3150 = vmatmul.mubr.bf16.vlgmr.msra.gmra.mrb[4].mxu0 %v2548_v43 }
 0x566   : > { %v2647_v54 = vpop.f32.mrb[4].mxu0 }
 0x567   : > { %v2653_v53 = vpack.c.bf16 %v2647_v54, %v2647_v54  ;;  %v3151_v47 = vpop.f32.mrb[5].mxu0 }
 0x568   : > { %v2650_v26 = vpop.f32.mrb[6].mxu0 }
 0x569   : > { %v3152_v0 = vpop.f32.mrb[7].mxu0  ;;  %3170 = vmatmul.mubr.bf16.vlgmr.msra.gmra.mrb[16].mxu1 %v2653_v53 }
 0x56a   : > { %3484 = shalt.err (!%p3481_p5)
}
 0x56b   : > { %s3485_s13 = scalar_lea.hbm %s5207_s4, 128  ;;  %s3489_s2 = scalar_lea.hbm %s5342_s0, 256 }
 0x56c   : > { %p3486_p6 = scmp.ne.s32.totalorder %s5207_s4, %s3485_s13  ;;  %p3490_p12 = scmp.lt.u32.totalorder %s5207_s4, %s5342_s0 }
 0x56d   : > { %p3491_p11 = scmp.lt.u32.totalorder %s3489_s2, %s3485_s13  ;;  %p3493_p0 = scmp.lt.u32.totalorder %s3485_s13, %s5207_s4 }
 0x56e   : > { %p3487_p10 = pnand %p3486_p6, %p5343_p2 }
 0x56f   : > { %p3492_p9 = por %p3491_p11, %p3490_p12 }
 0x570   : > { %p3488_p7 = pneg %p3487_p10 }
 0x571   : > { %p3494_p4 = por %p3493_p0, %p3492_p9 }
 0x573   : > { %p3495_p8 = pnand %p3494_p4, %p3488_p7 }
 0x575   : > { %3498 = shalt.err (!%p3495_p8)
}
 0x576   : > { %3190 = dma.vmem_to_hbm [thread:$0]  (%p5343_p2), %s2804_s28, 128, %s5207_s4, %s2775_s24   ;;  %v3326_v37 = vld [vmem:[%s3937_s9] sm:$0xf] }
 0x577   : > { %s5344_s15 = sld [smem:[#allocation29_spill]]  ;;  %v2765_v59 = vunpack.c.l.bf16 %v3326_v37  ;;  %s508_s27 = scalar_lea.vmem [#allocation13], %s2985_s25 }
 0x578   : > { %s2789_s14 = sshll.u32 %s508_s27, 4  ;;  %s5345_s4 = sld [smem:[#allocation30_spill]]  ;;  %s5240_s14 = int_to_ptr.vmem [resolvable:$true] %s2789_s14 }
 0x579   : > { %s2770_s9 = scalar_lea.sflag [#allocation6], %s3925_s8  ;;  %s3499_s25 = scalar_lea.vmem %s5240_s14, 128 }
 0x57a   : > { %p3500_p1 = scmp.ne.s32.totalorder %s5240_s14, %s3499_s25  ;;  %s3610_s24 = smov [#allocation13]  }
 0x57b   : > { %s3503_s18 = sshll.u32 %s3610_s24, 4  ;;  %s3504_s18 = int_to_ptr.vmem [resolvable:$false] %s3503_s18 }
 0x57c   : > { %p3501_p13 = pnand %p3500_p1, %p5343_p2  ;;  %s3505_s16 = scalar_lea.vmem %s3504_s18, 256 }
 0x57d   : > { %v3022_v62 = vld [vmem:[%s5344_s15] ss:$0 sm:$0xff]  ;;  %p3506_p5 = scmp.lt.s32.totalorder %s5240_s14, %s3504_s18  ;;  %p3507_p6 = scmp.lt.s32.totalorder %s3505_s16, %s3499_s25 }
 0x57e   : > { %s5238_s28 = scalar_lea.hbm %s5345_s4, %s3033_s22  ;;  %p3502_p3 = pneg %p3501_p13 }
 0x57f   : > { %p3508_p10 = por %p3507_p6, %p3506_p5 }
 0x581   : > { %p3509_p7 = pnand %p3508_p10, %p3502_p3 }
 0x63c   : > { %v2759_v40 = vpop.f32.mrb[16].mxu1 }
 0x63d   : > { %v2760_v63 = vadd.f32 %v3022_v62, %v2759_v40  ;;  %v3171_v50 = vpop.f32.mrb[17].mxu1 }
 0x63e   : > { %v2762_v41 = vpop.f32.mrb[18].mxu1 }
 0x63f   : > { %v2766_v33 = vmul.f32 %v2765_v59, %v2760_v63  ;;  %v3172_v4 = vpop.f32.mrb[19].mxu1 }
 0x641   : > { %2767 = vst [vmem:[%s508_s27] sm:$0xff] %v2766_v33 }
 0x642   : > { %3512 = shalt.err (!%p3509_p7)
}
 0x643   : > { %s3513_s8 = scalar_lea.hbm %s5238_s28, 128  ;;  %s3517_s30 = scalar_lea.hbm %s5345_s4, 256 }
 0x644   : > { %p3514_p12 = scmp.ne.s32.totalorder %s5238_s28, %s3513_s8  ;;  %p3518_p0 = scmp.lt.u32.totalorder %s5238_s28, %s5345_s4 }
 0x645   : > { %p3519_p4 = scmp.lt.u32.totalorder %s3517_s30, %s3513_s8  ;;  %p3521_p1 = scmp.lt.u32.totalorder %s3513_s8, %s5238_s28 }
 0x646   : > { %p3515_p11 = pnand %p3514_p12, %p5343_p2 }
 0x647   : > { %p3520_p8 = por %p3519_p4, %p3518_p0 }
 0x648   : > { %p3516_p9 = pneg %p3515_p11 }
 0x649   : > { %p3522_p13 = por %p3521_p1, %p3520_p8 }
 0x64b   : > { %p3523_p3 = pnand %p3522_p13, %p3516_p9 }
 0x64d   : > { %3526 = shalt.err (!%p3523_p3)
}
 0x64e   : > { %3189 = dma.vmem_to_hbm [thread:$0]  (%p5343_p2), %s5240_s14, 128, %s5238_s28, %s2770_s9  }
 0x64f PF: > { %s5346_s26 = sld [smem:[#allocation22_spill]]  ;;  %s5347_s15 = sld [smem:[#allocation24_spill]] }
 0x650   : > { %p5349_p6 = scmp.ge.s32.totalorder %s3597_s7, 2 }
 0x655   : > { %s2815_s27 = sand.u32 1, %s5346_s26   ;;  %p5348_p5 = scmp.ne.s32.totalorder %s5347_s15, 0 }
 0x656   : > { %s2816_s13 = scalar_lea.sflag [#allocation6], %s2815_s27 }
 0x657   : > { %p3211_p10 = pnand %p5349_p6, %p5348_p5 }
 0x659   : > { %3568 = dma.done.wait (!%p3211_p10), %s2816_s13, 128  }
 0x65a   : > { %3570 = vsyncadd (!%p3211_p10), %s2816_s13, 4294967168  ;;  %s2825_s11 = scalar_lea.sflag [#allocation15], %s2815_s27 }
 0x65b   : > { %3572 = dma.done.wait (!%p3211_p10), %s2825_s11, 128  }
 0x65c   : > { %3574 = vsyncadd (!%p3211_p10), %s2825_s11, 4294967168  ;;  %s36_s7 = sadd.s32 1, %s3597_s7   ;;  %s5350_s19 = smov %s3581_s20 }
 0x65d   : > { %p33_p7 = scmp.ge.s32.totalorder %s36_s7, 4   ;;  %s5351_s20 = smov %s3585_s21 }
 0x65e   : > { %s5352_s21 = smov %s3845_s29  ;;  %s5353_s22 = smov %s3593_s23 }
 0x65f   : > { %s5354_s23 = smov %s5356_s12  ;;  %35 = sbr.rel (!%p33_p7) target bundleno = 20 (0x14), region = 147 }
 0x666   :  { %2830 = vsyncpa [#allocation5], 1 }
 0x667   :  { %2832 = vsyncpa [#allocation5 + $0x1], 1 }
 0x668   :  { %2833 = vsyncpa [#allocation8], 1 }
 0x669   :  { %2835 = vsyncpa [#allocation8 + $0x1], 1 }
 0x66a   :  { %2836 = vsyncpa [#allocation11], 1 }
 0x66b   :  { %2837 = vsyncpa [#allocation6], 1 }
 0x66c   :  { %2839 = vsyncpa [#allocation6 + $0x1], 1 }
 0x66d   :  { %2840 = vsyncpa [#allocation15], 1 }
 0x66e   :  { %2842 = vsyncpa [#allocation15 + $0x1], 1 }

</bundles_post_ra>
